<compile_context>
chip_gen: v7x
topology: tpu7x:2x2x1
jax: 0.10.0
libtpu: 0.0.40
codegen_flags: <defaults>
</compile_context>

<pallas_src>
import functools
import math

import jax
import jax.numpy as jnp
from jax import lax
from jax.experimental import pallas as pl
from jax.experimental.pallas import tpu as pltpu


def _round_up(x, m):
    return ((x + m - 1) // m) * m


# ----------------------------------------------------------------------------
# Parameter-setup glue: symmetric int8 group compression (mirrors `compress`
# with default_compression_config = num_bits=8, group_size=256, group_dim=1,
# symmetric=True).  Forward does NOT consume it (matches the PyTorch module);
# it is only kept around as module state.
# ----------------------------------------------------------------------------
def compress_symmetric_int8(w, group_size=256, group_dim=1, num_bits=8):
    original_shape = w.shape
    dim = original_shape[group_dim]
    num_groups = (dim + group_size - 1) // group_size
    pad_len = (group_size - dim % group_size) % group_size
    if pad_len != 0:
        pad_cfg = [(0, 0)] * w.ndim
        pad_cfg[group_dim] = (0, pad_len)
        w = jnp.pad(w, pad_cfg)
    new_shape = (
        original_shape[:group_dim]
        + (num_groups, group_size)
        + original_shape[group_dim + 1 :]
    )
    data = w.reshape(new_shape)
    B = 2 ** (num_bits - 1) - 1
    max_abs = jnp.max(jnp.abs(data), axis=group_dim + 1, keepdims=True)
    # Guard against all-zero groups (would give inf/NaN scales).
    scale = jnp.where(max_abs == 0, 1.0, B / max_abs)
    q = jnp.clip(jnp.round(data * scale), -B, B).astype(jnp.int8)
    return q, scale, original_shape


# ----------------------------------------------------------------------------
# Pallas kernel: tiled matmul with bias, f32 accumulation.
#   x_ref: (tm, tk)  compute dtype (bf16 by default)
#   w_ref: (tn, tk)  compute dtype, native PyTorch (out, in) layout
#   b_ref: (1, tn)   f32
# grid = (Mp//tm, Np//tn, Kp//tk); reduction axis (k) is last and "arbitrary".
# ----------------------------------------------------------------------------
def _linear_kernel(x_ref, w_ref, b_ref, o_ref, acc_ref):
    @pl.when(pl.program_id(2) == 0)
    def _():
        acc_ref[...] = jnp.zeros_like(acc_ref)

    acc_ref[...] += lax.dot_general(
        x_ref[...],
        w_ref[...],
        dimension_numbers=(((1,), (1,)), ((), ())),  # contract x.K with w.K
        preferred_element_type=jnp.float32,
    )

    @pl.when(pl.program_id(2) == pl.num_programs(2) - 1)
    def _():
        o_ref[...] = (acc_ref[...] + b_ref[...]).astype(o_ref.dtype)


@functools.partial(jax.jit, static_argnames=("tm", "tn", "tk", "compute_dtype"))
def clinear_forward(x, weight, bias, *, tm=256, tn=512, tk=1024,
                    compute_dtype=jnp.bfloat16):
    """y = x @ weight.T + bias, matching F.linear.

    x      : (..., K)
    weight : (N, K)   -- native PyTorch layout, consumed WITHOUT transpose
    bias   : (N,) or None
    Matmul runs in `compute_dtype` (bf16) with f32 accumulation; output is
    returned in x.dtype.  Tile defaults target v6e/v7x; on v5e prefer tm=128.
    """
    *lead, K = x.shape
    N, Kw = weight.shape
    assert Kw == K, "weight in_features must match x last dim"
    M = math.prod(lead) if lead else 1
    out_dtype = x.dtype

    # Clamp tiles to the (hardware-aligned) problem size.
    tm = min(tm, _round_up(M, 8))
    tn = min(tn, _round_up(N, 128))
    tk = min(tk, _round_up(K, 128))

    Mp = _round_up(M, tm)
    Np = _round_up(N, tn)
    Kp = _round_up(K, tk)

    # v7x megacore: keep >= 2 blocks along a parallel axis so both
    # TensorCores get work (prefer splitting N).
    if (Mp // tm) == 1 and (Np // tn) == 1 and tn >= 256:
        tn = max(128, (tn // 2 // 128) * 128)
        Np = _round_up(N, tn)

    x2 = x.reshape(M, K)
    if x2.dtype != compute_dtype:
        x2 = x2.astype(compute_dtype)
    w2 = weight if weight.dtype == compute_dtype else weight.astype(compute_dtype)
    if bias is None:
        b2 = jnp.zeros((1, N), jnp.float32)
    else:
        b2 = bias.astype(jnp.float32).reshape(1, N)

    # Pad to tile multiples (no-op for typical multiple-of-128 feature dims).
    if Mp != M or Kp != K:
        x2 = jnp.pad(x2, ((0, Mp - M), (0, Kp - K)))
    if Np != N or Kp != K:
        w2 = jnp.pad(w2, ((0, Np - N), (0, Kp - K)))
    if Np != N:
        b2 = jnp.pad(b2, ((0, 0), (0, Np - N)))

    grid = (Mp // tm, Np // tn, Kp // tk)

    y2 = pl.pallas_call(
        _linear_kernel,
        out_shape=jax.ShapeDtypeStruct((Mp, Np), out_dtype),
        grid_spec=pltpu.PrefetchScalarGridSpec(
            num_scalar_prefetch=0,
            grid=grid,
            in_specs=[
                pl.BlockSpec((tm, tk), lambda i, j, k: (i, k)),
                pl.BlockSpec((tn, tk), lambda i, j, k: (j, k)),
                pl.BlockSpec((1, tn), lambda i, j, k: (0, j)),
            ],
            out_specs=pl.BlockSpec((tm, tn), lambda i, j, k: (i, j)),
            scratch_shapes=[pltpu.VMEM((tm, tn), jnp.float32)],
        ),
        compiler_params=pltpu.CompilerParams(
            dimension_semantics=("parallel", "parallel", "arbitrary"),
            # Tile budget (~4-6 MiB double-buffered) fits every generation;
            # keep the scoped limit modest so it is safe on v7x's 64 MiB VMEM.
            vmem_limit_bytes=32 * 1024 * 1024,
        ),
    )(x2, w2, b2)

    if Mp != M or Np != N:
        y2 = y2[:M, :N]
    return y2.reshape(*lead, N)


class CLinearPallas:
    """Mirror of the PyTorch CLinear module (inference path only)."""

    def __init__(self, weight, bias):
        # Stored compressed weight (state only; forward uses full precision,
        # same as the PyTorch module).
        self.weight = compress_symmetric_int8(weight)
        self.full_precision_weight = weight
        # Pre-cast once so forward does not re-cast the weight every call.
        self.weight_bf16 = weight.astype(jnp.bfloat16)
        self.bias = bias
        # TODO(synk): update_weight backward hook (SGD step + recompress) has
        # no forward-pass Pallas equivalent; omitted.
        # TODO(synk): consuming the int8 group-compressed weight in-kernel
        # (4x less weight HBM traffic on v5e/v6e) is not implemented; v7x's
        # MXU has no integer path so it would need in-kernel dequant to bf16.

    def __call__(self, x):
        return clinear_forward(x, self.weight_bf16, self.bias)


if __name__ == "__main__":
    key = jax.random.PRNGKey(0)
    k_x, k_w, k_b = jax.random.split(key, 3)

    # Small but kernel-meaningful shapes; seq=63 exercises the M-padding path,
    # K=2048 gives a 2-step reduction loop, N=512 splits into 2 parallel tiles.
    batch, seq = 2, 63
    in_features, out_features = 2048, 512

    x = jax.random.normal(k_x, (batch, seq, in_features), dtype=jnp.float32)
    w = jax.random.normal(k_w, (out_features, in_features), dtype=jnp.float32) * 0.02
    b = jax.random.normal(k_b, (out_features,), dtype=jnp.float32) * 0.1

    layer = CLinearPallas(w, b)
    y = jax.block_until_ready(layer(x))
    assert y.shape == (batch, seq, out_features)

    # Reference with identical compute precision (bf16 inputs, f32 accumulate).
    x2 = x.reshape(-1, in_features).astype(jnp.bfloat16)
    wb = w.astype(jnp.bfloat16)
    y_ref = lax.dot_general(
        x2, wb, dimension_numbers=(((1,), (1,)), ((), ())),
        preferred_element_type=jnp.float32,
    ) + b
    y_ref = y_ref.reshape(batch, seq, out_features)
    assert jnp.allclose(y, y_ref, atol=1e-2, rtol=1e-2), float(
        jnp.max(jnp.abs(y - y_ref))
    )

    # Sanity vs full-f32 F.linear reference (looser tol due to bf16 inputs).
    y_f32 = x @ w.T + b
    assert jnp.allclose(y, y_f32, atol=5e-2, rtol=5e-2), float(
        jnp.max(jnp.abs(y - y_f32))
    )

    print("KERNEL_OK")
</pallas_src>

<mosaic_0001>
module attributes {stable_mosaic.version = 11 : i64} {
  func.func @_linear_kernel(%arg0: i32, %arg1: i32, %arg2: i32, %arg3: memref<128x1024xbf16, #tpu.memory_space<vmem>>, %arg4: memref<256x1024xbf16, #tpu.memory_space<vmem>>, %arg5: memref<1x256xf32, #tpu.memory_space<vmem>>, %arg6: memref<128x256xf32, #tpu.memory_space<vmem>>, %arg7: memref<128x256xf32, #tpu.memory_space<vmem>>) attributes {dimension_semantics = [#tpu.dimension_semantics<parallel>, #tpu.dimension_semantics<parallel>, #tpu.dimension_semantics<arbitrary>], iteration_bounds = array<i64: 1, 2, 2>, scalar_prefetch = 0 : i64, scratch_operands = 1 : i64, tpu.core_type = #tpu.core_type<tc>, window_params = [{transform_indices = @transform_0, window_bounds = array<i64: 128, 1024>}, {transform_indices = @transform_1, window_bounds = array<i64: 256, 1024>}, {transform_indices = @transform_2, window_bounds = array<i64: 1, 256>}, {transform_indices = @transform_3, window_bounds = array<i64: 128, 256>}]} {
    %c0_i32 = arith.constant 0 : i32
    %0 = arith.cmpi eq, %arg2, %c0_i32 : i32
    %1 = arith.extui %0 : i1 to i32
    %c0_i32_0 = arith.constant 0 : i32
    %2 = arith.cmpi ne, %1, %c0_i32_0 : i32
    scf.if %2 {
      %cst_9 = arith.constant 0.000000e+00 : f32
      %12 = vector.broadcast %cst_9 : f32 to vector<128x256xf32>
      %c0_10 = arith.constant 0 : index
      %c0_11 = arith.constant 0 : index
      %13 = vector.load %arg7[%c0_10, %c0_11] : memref<128x256xf32, #tpu.memory_space<vmem>>, vector<128x256xf32>
      tpu.vector_store %arg7[%c0_10, %c0_11], %12 {strides = array<i32>} : memref<128x256xf32, #tpu.memory_space<vmem>>, vector<128x256xf32>,
    } else {
    }
    %c0 = arith.constant 0 : index
    %c0_1 = arith.constant 0 : index
    %3 = vector.load %arg7[%c0, %c0_1] : memref<128x256xf32, #tpu.memory_space<vmem>>, vector<128x256xf32>
    %c0_2 = arith.constant 0 : index
    %c0_3 = arith.constant 0 : index
    %4 = vector.load %arg3[%c0_2, %c0_3] : memref<128x1024xbf16, #tpu.memory_space<vmem>>, vector<128x1024xbf16>
    %c0_4 = arith.constant 0 : index
    %c0_5 = arith.constant 0 : index
    %5 = vector.load %arg4[%c0_4, %c0_5] : memref<256x1024xbf16, #tpu.memory_space<vmem>>, vector<256x1024xbf16>
    %cst = arith.constant dense<0.000000e+00> : vector<128x256xf32>
    %6 = tpu.matmul %4, %5, %cst {dimension_numbers = #tpu.dot_dimension_numbers<[1], [1], [0], [0], [0, 0, 1, 0], [], []>} : vector<128x1024xbf16>, vector<256x1024xbf16>, vector<128x256xf32> -> vector<128x256xf32>
    %7 = arith.addf %3, %6 : vector<128x256xf32>
    %c0_6 = arith.constant 0 : index
    %c0_7 = arith.constant 0 : index
    %8 = vector.load %arg7[%c0_6, %c0_7] : memref<128x256xf32, #tpu.memory_space<vmem>>, vector<128x256xf32>
    tpu.vector_store %arg7[%c0_6, %c0_7], %7 {strides = array<i32>} : memref<128x256xf32, #tpu.memory_space<vmem>>, vector<128x256xf32>,
    %c1_i32 = arith.constant 1 : i32
    %9 = arith.cmpi eq, %arg2, %c1_i32 : i32
    %10 = arith.extui %9 : i1 to i32
    %c0_i32_8 = arith.constant 0 : i32
    %11 = arith.cmpi ne, %10, %c0_i32_8 : i32
    scf.if %11 {
      %c0_9 = arith.constant 0 : index
      %c0_10 = arith.constant 0 : index
      %12 = vector.load %arg7[%c0_9, %c0_10] : memref<128x256xf32, #tpu.memory_space<vmem>>, vector<128x256xf32>
      %c0_11 = arith.constant 0 : index
      %c0_12 = arith.constant 0 : index
      %13 = vector.load %arg5[%c0_11, %c0_12] : memref<1x256xf32, #tpu.memory_space<vmem>>, vector<1x256xf32>
      %14 = vector.broadcast %13 : vector<1x256xf32> to vector<128x256xf32>
      %15 = arith.addf %12, %14 : vector<128x256xf32>
      %c0_13 = arith.constant 0 : index
      %c0_14 = arith.constant 0 : index
      %16 = vector.load %arg6[%c0_13, %c0_14] : memref<128x256xf32, #tpu.memory_space<vmem>>, vector<128x256xf32>
      tpu.vector_store %arg6[%c0_13, %c0_14], %15 {strides = array<i32>} : memref<128x256xf32, #tpu.memory_space<vmem>>, vector<128x256xf32>,
    } else {
    }
    return
  }
  func.func @transform_0(%arg0: i32, %arg1: i32, %arg2: i32) -> (i32, i32) {
    %c0_i32 = arith.constant 0 : i32
    return %arg0, %arg2 : i32, i32
  }
  func.func @transform_1(%arg0: i32, %arg1: i32, %arg2: i32) -> (i32, i32) {
    %c0_i32 = arith.constant 0 : i32
    return %arg1, %arg2 : i32, i32
  }
  func.func @transform_2(%arg0: i32, %arg1: i32, %arg2: i32) -> (i32, i32) {
    %c0_i32 = arith.constant 0 : i32
    %c0_i32_0 = arith.constant 0 : i32
    return %c0_i32, %arg1 : i32, i32
  }
  func.func @transform_3(%arg0: i32, %arg1: i32, %arg2: i32) -> (i32, i32) {
    %c0_i32 = arith.constant 0 : i32
    return %arg0, %arg1 : i32, i32
  }
}

</mosaic_0001>

<bundles_post_ra>
// kernel: clinear_forward.1
= control target key start
LH: loop header
LB: loop body
LE: loop exit
PB: predicated region body
PF: predicated region fallthrough
CT: control target
= control target key end

     0   :  { %s4161_s0 = inlined_call_operand.vmem [shape: bf16[128,2048], index: 0, kind: input, shape index: {}]   ;;  %s4162_s1 = inlined_call_operand.vmem [shape: bf16[512,2048], index: 1, kind: input, shape index: {}]   ;;  %s4163_s2 = inlined_call_operand.vmem [shape: f32[1,512], index: 2, kind: input, shape index: {}]   ;;  %s4164_s3 = inlined_call_operand.vmem [shape: f32[128,512], index: 3, kind: output, shape index: {}]  }
   0x1   :  { %4166 = sst [smem:[#allocation7_spill]] %s4161_s0 }
   0x2   :  { %4167 = sst [smem:[#allocation8_spill]] %s4162_s1 }
   0x3   :  { %s3221_s12 = smov 0   ;;  %s3223_s13 = smov 0  }
   0x4   :  { %s3225_s14 = smov 0   ;;  %s3227_s15 = smov 0  }
   0x5   :  { %s3229_s16 = smov 0   ;;  %s3231_s17 = smov 0  }
   0x6   :  { %s3233_s18 = smov 0   ;;  %s3235_s19 = smov 0  }
   0x7   :  { %s3237_s20 = smov 0   ;;  %s3239_s21 = smov 0  }
   0x8   :  { %s3241_s22 = smov 0  }
   0x9 LB: > { %s2708_s23 = sadd.s32 4294967295, %s3198_s22   ;;  %s25_s24 = sadd.s32 1, %s3190_s20  ;;  %s3198_s22 = sphi %s3241_s22, %s13_s22   ;;  %s3194_s21 = sphi %s3239_s21, %s4184_s21   ;;  %s3190_s20 = sphi %s3237_s20, %s4183_s20   ;;  %s3186_s19 = sphi %s3235_s19, %s4182_s19   ;;  %s3182_s18 = sphi %s3233_s18, %s4181_s18   ;;  %s3178_s17 = sphi %s3231_s17, %s4180_s17   ;;  %s3174_s16 = sphi %s3229_s16, %s4179_s16   ;;  %s3170_s15 = sphi %s3227_s15, %s4178_s15   ;;  %s3166_s14 = sphi %s3225_s14, %s4177_s14   ;;  %s3162_s13 = sphi %s3223_s13, %s4176_s13   ;;  %s3158_s12 = sphi %s3221_s12, %s4175_s12  }
   0xa   : > { %p26_p0 = scmp.ge.s32.totalorder %s25_s24, 2  ;;  %s28_s25 = sadd.s32 1, %s3194_s21 }
   0xb   : > { %s41_s26 = sadd.s32 1, %s3178_s17  ;;  %p48_p1 = scmp.ne.s32.totalorder %s3178_s17, %s3174_s16 }
   0xc   : > { %s4186_s24 = smov (%p26_p0, %s25_s24), 0  ;;  %s4188_s25 = smov (!%p26_p0, %s28_s25), %s3194_s21 }
   0xd   : > { %s37_s27 = ssub.s32 %s3190_s20, %s4186_s24  ;;  %p49_p2 = scmp.eq.s32.totalorder %s3198_s22, 0 }
   0xe   : > { %p30_p3 = scmp.ge.s32.totalorder %s4188_s25, 2  ;;  %p39_p4 = scmp.eq.s32.totalorder %s37_s27, 0 }
   0xf   : > { %p3288_p5 = por %p49_p2, %p48_p1  ;;  %s69_s29 = sadd.s32 1, %s3170_s15 }
  0x10   : > { %s4190_s25 = smov (%p30_p3, %s4188_s25), 0  ;;  %p76_p6 = scmp.ne.s32.totalorder %s3170_s15, %s3166_s14 }
  0x11   : > { %4169 = sst [smem:[#allocation6_spill]] %s4190_s25  ;;  %s64_s4 = ssub.s32 %s3194_s21, %s4190_s25 }
  0x12   : > { %s3296_s30 = scalar_select %p39_p4, %s3178_s17, %s41_s26  }
  0x13   : > { %s66_s5 = sor.u32 %s64_s4, %s37_s27  ;;  %p121_p7 = scmp.eq.s32.totalorder %s64_s4, 0 }
  0x14   : > { %p67_p8 = scmp.eq.s32.totalorder %s66_s5, 0  ;;  %p3302_p9 = por %p76_p6, %p49_p2 }
  0x15   : > { %s123_s7 = sadd.s32 1, %s3162_s13  ;;  %p133_p10 = scmp.ne.s32.totalorder %s3162_s13, %s3158_s12 }
  0x16   : > { %s3310_s8 = scalar_select %p67_p8, %s3170_s15, %s69_s29  }
  0x17   : > { %s3313_s9 = scalar_select %p121_p7, %s3162_s13, %s123_s7  }
  0x18   : > { %p134_p11 = scmp.eq.s32.totalorder %s2708_s23, 3  ;;  %p2711_p13 = scmp.ge.s32.totalorder %s3198_s22, 4 }
  0x1a   : > { %p3315_p12 = por %p134_p11, %p133_p10  ;;  %156 = sbr.rel (%p2711_p13) target bundleno = 149 (0x95), region = 16 }
  0x21   : > { %159 = sbr.rel (!%p3288_p5) target bundleno = 75 (0x4b), region = 20  ;;  %s161_s11 = sand.u32 (%p3288_p5), 1, %s3178_s17  }
  0x22   : > { %s2924_s26 = sshll.u32 (%p3288_p5), %s3190_s20, 5  ;;  %s2712_s27 = sshll.u32 (%p3288_p5), %s161_s11, 9 }
  0x23   : > { %s4172_s0 = sld [smem:[#allocation7_spill]] (%p3288_p5)  ;;  %s3332_s23 = scalar_lea.vmem (%p3288_p5), [#allocation3], %s2712_s27 }
  0x29   : > { %s3327_s5 = scalar_lea.vmem %s4172_s0, %s2924_s26 }
  0x2a   : > { %v182_v0 = vld [vmem:[%s3327_s5] sm:$0xff]  ;;  %v184_v1 = vld [vmem:[%s3327_s5 + $0x8] sm:$0xff]  ;;  %v186_v2 = vld [vmem:[%s3327_s5 + $0x10] sm:$0xff] }
  0x2b   : > { %183 = vst [vmem:[%s3332_s23] sm:$0xff] %v182_v0  ;;  %185 = vst [vmem:[%s3332_s23 + $0x8] sm:$0xff] %v184_v1  ;;  %v188_v3 = vld [vmem:[%s3327_s5 + $0x18] sm:$0xff]  ;;  %v190_v4 = vld [vmem:[%s3327_s5 + $0x40] sm:$0xff] }
  0x2c   : > { %187 = vst [vmem:[%s3332_s23 + $0x10] sm:$0xff] %v186_v2  ;;  %v192_v5 = vld [vmem:[%s3327_s5 + $0x48] sm:$0xff]  ;;  %189 = vst [vmem:[%s3332_s23 + $0x18] sm:$0xff] %v188_v3  ;;  %v194_v6 = vld [vmem:[%s3327_s5 + $0x50] sm:$0xff] }
  0x2d   : > { %191 = vst [vmem:[%s3332_s23 + $0x20] sm:$0xff] %v190_v4  ;;  %193 = vst [vmem:[%s3332_s23 + $0x28] sm:$0xff] %v192_v5  ;;  %v196_v7 = vld [vmem:[%s3327_s5 + $0x58] sm:$0xff]  ;;  %v198_v8 = vld [vmem:[%s3327_s5 + $0x80] sm:$0xff] }
  0x2e   : > { %195 = vst [vmem:[%s3332_s23 + $0x30] sm:$0xff] %v194_v6  ;;  %197 = vst [vmem:[%s3332_s23 + $0x38] sm:$0xff] %v196_v7  ;;  %v200_v9 = vld [vmem:[%s3327_s5 + $0x88] sm:$0xff]  ;;  %v202_v10 = vld [vmem:[%s3327_s5 + $0x90] sm:$0xff] }
  0x2f   : > { %199 = vst [vmem:[%s3332_s23 + $0x40] sm:$0xff] %v198_v8  ;;  %v204_v11 = vld [vmem:[%s3327_s5 + $0x98] sm:$0xff]  ;;  %201 = vst [vmem:[%s3332_s23 + $0x48] sm:$0xff] %v200_v9  ;;  %v206_v12 = vld [vmem:[%s3327_s5 + $0xc0] sm:$0xff] }
  0x30   : > { %203 = vst [vmem:[%s3332_s23 + $0x50] sm:$0xff] %v202_v10  ;;  %205 = vst [vmem:[%s3332_s23 + $0x58] sm:$0xff] %v204_v11  ;;  %v208_v13 = vld [vmem:[%s3327_s5 + $0xc8] sm:$0xff]  ;;  %v210_v14 = vld [vmem:[%s3327_s5 + $0xd0] sm:$0xff] }
  0x31   : > { %207 = vst [vmem:[%s3332_s23 + $0x60] sm:$0xff] %v206_v12  ;;  %209 = vst [vmem:[%s3332_s23 + $0x68] sm:$0xff] %v208_v13  ;;  %v212_v15 = vld [vmem:[%s3327_s5 + $0xd8] sm:$0xff]  ;;  %v214_v16 = vld [vmem:[%s3327_s5 + $0x100] sm:$0xff] }
  0x32   : > { %211 = vst [vmem:[%s3332_s23 + $0x70] sm:$0xff] %v210_v14  ;;  %v216_v17 = vld [vmem:[%s3327_s5 + $0x108] sm:$0xff]  ;;  %213 = vst [vmem:[%s3332_s23 + $0x78] sm:$0xff] %v212_v15  ;;  %v218_v18 = vld [vmem:[%s3327_s5 + $0x110] sm:$0xff] }
  0x33   : > { %215 = vst [vmem:[%s3332_s23 + $0x80] sm:$0xff] %v214_v16  ;;  %217 = vst [vmem:[%s3332_s23 + $0x88] sm:$0xff] %v216_v17  ;;  %v220_v19 = vld [vmem:[%s3327_s5 + $0x118] sm:$0xff]  ;;  %v222_v20 = vld [vmem:[%s3327_s5 + $0x140] sm:$0xff] }
  0x34   : > { %219 = vst [vmem:[%s3332_s23 + $0x90] sm:$0xff] %v218_v18  ;;  %221 = vst [vmem:[%s3332_s23 + $0x98] sm:$0xff] %v220_v19  ;;  %v224_v21 = vld [vmem:[%s3327_s5 + $0x148] sm:$0xff]  ;;  %v226_v22 = vld [vmem:[%s3327_s5 + $0x150] sm:$0xff] }
  0x35   : > { %223 = vst [vmem:[%s3332_s23 + $0xa0] sm:$0xff] %v222_v20  ;;  %v228_v23 = vld [vmem:[%s3327_s5 + $0x158] sm:$0xff]  ;;  %225 = vst [vmem:[%s3332_s23 + $0xa8] sm:$0xff] %v224_v21  ;;  %v230_v24 = vld [vmem:[%s3327_s5 + $0x180] sm:$0xff] }
  0x36   : > { %227 = vst [vmem:[%s3332_s23 + $0xb0] sm:$0xff] %v226_v22  ;;  %229 = vst [vmem:[%s3332_s23 + $0xb8] sm:$0xff] %v228_v23  ;;  %v232_v25 = vld [vmem:[%s3327_s5 + $0x188] sm:$0xff]  ;;  %v234_v26 = vld [vmem:[%s3327_s5 + $0x190] sm:$0xff] }
  0x37   : > { %231 = vst [vmem:[%s3332_s23 + $0xc0] sm:$0xff] %v230_v24  ;;  %233 = vst [vmem:[%s3332_s23 + $0xc8] sm:$0xff] %v232_v25  ;;  %v236_v27 = vld [vmem:[%s3327_s5 + $0x198] sm:$0xff]  ;;  %v238_v28 = vld [vmem:[%s3327_s5 + $0x1c0] sm:$0xff] }
  0x38   : > { %235 = vst [vmem:[%s3332_s23 + $0xd0] sm:$0xff] %v234_v26  ;;  %v240_v29 = vld [vmem:[%s3327_s5 + $0x1c8] sm:$0xff]  ;;  %237 = vst [vmem:[%s3332_s23 + $0xd8] sm:$0xff] %v236_v27  ;;  %v242_v30 = vld [vmem:[%s3327_s5 + $0x1d0] sm:$0xff] }
  0x39   : > { %239 = vst [vmem:[%s3332_s23 + $0xe0] sm:$0xff] %v238_v28  ;;  %241 = vst [vmem:[%s3332_s23 + $0xe8] sm:$0xff] %v240_v29  ;;  %v244_v31 = vld [vmem:[%s3327_s5 + $0x1d8] sm:$0xff]  ;;  %v246_v32 = vld [vmem:[%s3327_s5 + $0x200] sm:$0xff] }
  0x3a   : > { %243 = vst [vmem:[%s3332_s23 + $0xf0] sm:$0xff] %v242_v30  ;;  %245 = vst [vmem:[%s3332_s23 + $0xf8] sm:$0xff] %v244_v31  ;;  %v248_v33 = vld [vmem:[%s3327_s5 + $0x208] sm:$0xff]  ;;  %v250_v34 = vld [vmem:[%s3327_s5 + $0x210] sm:$0xff] }
  0x3b   : > { %247 = vst [vmem:[%s3332_s23 + $0x100] sm:$0xff] %v246_v32  ;;  %v252_v35 = vld [vmem:[%s3327_s5 + $0x218] sm:$0xff]  ;;  %249 = vst [vmem:[%s3332_s23 + $0x108] sm:$0xff] %v248_v33  ;;  %v254_v36 = vld [vmem:[%s3327_s5 + $0x240] sm:$0xff] }
  0x3c   : > { %251 = vst [vmem:[%s3332_s23 + $0x110] sm:$0xff] %v250_v34  ;;  %253 = vst [vmem:[%s3332_s23 + $0x118] sm:$0xff] %v252_v35  ;;  %v256_v37 = vld [vmem:[%s3327_s5 + $0x248] sm:$0xff]  ;;  %v258_v38 = vld [vmem:[%s3327_s5 + $0x250] sm:$0xff] }
  0x3d   : > { %255 = vst [vmem:[%s3332_s23 + $0x120] sm:$0xff] %v254_v36  ;;  %257 = vst [vmem:[%s3332_s23 + $0x128] sm:$0xff] %v256_v37  ;;  %v260_v39 = vld [vmem:[%s3327_s5 + $0x258] sm:$0xff]  ;;  %v262_v40 = vld [vmem:[%s3327_s5 + $0x280] sm:$0xff] }
  0x3e   : > { %259 = vst [vmem:[%s3332_s23 + $0x130] sm:$0xff] %v258_v38  ;;  %v264_v41 = vld [vmem:[%s3327_s5 + $0x288] sm:$0xff]  ;;  %261 = vst [vmem:[%s3332_s23 + $0x138] sm:$0xff] %v260_v39  ;;  %v266_v42 = vld [vmem:[%s3327_s5 + $0x290] sm:$0xff] }
  0x3f   : > { %263 = vst [vmem:[%s3332_s23 + $0x140] sm:$0xff] %v262_v40  ;;  %265 = vst [vmem:[%s3332_s23 + $0x148] sm:$0xff] %v264_v41  ;;  %v268_v43 = vld [vmem:[%s3327_s5 + $0x298] sm:$0xff]  ;;  %v270_v44 = vld [vmem:[%s3327_s5 + $0x2c0] sm:$0xff] }
  0x40   : > { %267 = vst [vmem:[%s3332_s23 + $0x150] sm:$0xff] %v266_v42  ;;  %269 = vst [vmem:[%s3332_s23 + $0x158] sm:$0xff] %v268_v43  ;;  %v272_v45 = vld [vmem:[%s3327_s5 + $0x2c8] sm:$0xff]  ;;  %v274_v46 = vld [vmem:[%s3327_s5 + $0x2d0] sm:$0xff] }
  0x41   : > { %271 = vst [vmem:[%s3332_s23 + $0x160] sm:$0xff] %v270_v44  ;;  %v276_v47 = vld [vmem:[%s3327_s5 + $0x2d8] sm:$0xff]  ;;  %273 = vst [vmem:[%s3332_s23 + $0x168] sm:$0xff] %v272_v45  ;;  %v278_v48 = vld [vmem:[%s3327_s5 + $0x300] sm:$0xff] }
  0x42   : > { %275 = vst [vmem:[%s3332_s23 + $0x170] sm:$0xff] %v274_v46  ;;  %277 = vst [vmem:[%s3332_s23 + $0x178] sm:$0xff] %v276_v47  ;;  %v280_v49 = vld [vmem:[%s3327_s5 + $0x308] sm:$0xff]  ;;  %v282_v50 = vld [vmem:[%s3327_s5 + $0x310] sm:$0xff] }
  0x43   : > { %279 = vst [vmem:[%s3332_s23 + $0x180] sm:$0xff] %v278_v48  ;;  %281 = vst [vmem:[%s3332_s23 + $0x188] sm:$0xff] %v280_v49  ;;  %v284_v51 = vld [vmem:[%s3327_s5 + $0x318] sm:$0xff]  ;;  %v286_v52 = vld [vmem:[%s3327_s5 + $0x340] sm:$0xff] }
  0x44   : > { %283 = vst [vmem:[%s3332_s23 + $0x190] sm:$0xff] %v282_v50  ;;  %v288_v53 = vld [vmem:[%s3327_s5 + $0x348] sm:$0xff]  ;;  %285 = vst [vmem:[%s3332_s23 + $0x198] sm:$0xff] %v284_v51  ;;  %v290_v54 = vld [vmem:[%s3327_s5 + $0x350] sm:$0xff] }
  0x45   : > { %287 = vst [vmem:[%s3332_s23 + $0x1a0] sm:$0xff] %v286_v52  ;;  %289 = vst [vmem:[%s3332_s23 + $0x1a8] sm:$0xff] %v288_v53  ;;  %v292_v55 = vld [vmem:[%s3327_s5 + $0x358] sm:$0xff]  ;;  %v294_v56 = vld [vmem:[%s3327_s5 + $0x380] sm:$0xff] }
  0x46   : > { %291 = vst [vmem:[%s3332_s23 + $0x1b0] sm:$0xff] %v290_v54  ;;  %293 = vst [vmem:[%s3332_s23 + $0x1b8] sm:$0xff] %v292_v55  ;;  %v296_v57 = vld [vmem:[%s3327_s5 + $0x388] sm:$0xff]  ;;  %v298_v58 = vld [vmem:[%s3327_s5 + $0x390] sm:$0xff] }
  0x47   : > { %295 = vst [vmem:[%s3332_s23 + $0x1c0] sm:$0xff] %v294_v56  ;;  %v300_v59 = vld [vmem:[%s3327_s5 + $0x398] sm:$0xff]  ;;  %297 = vst [vmem:[%s3332_s23 + $0x1c8] sm:$0xff] %v296_v57  ;;  %v302_v60 = vld [vmem:[%s3327_s5 + $0x3c0] sm:$0xff] }
  0x48   : > { %299 = vst [vmem:[%s3332_s23 + $0x1d0] sm:$0xff] %v298_v58  ;;  %301 = vst [vmem:[%s3332_s23 + $0x1d8] sm:$0xff] %v300_v59  ;;  %v304_v61 = vld [vmem:[%s3327_s5 + $0x3c8] sm:$0xff]  ;;  %v306_v62 = vld [vmem:[%s3327_s5 + $0x3d0] sm:$0xff] }
  0x49   : > { %303 = vst [vmem:[%s3332_s23 + $0x1e0] sm:$0xff] %v302_v60  ;;  %305 = vst [vmem:[%s3332_s23 + $0x1e8] sm:$0xff] %v304_v61  ;;  %v308_v63 = vld [vmem:[%s3327_s5 + $0x3d8] sm:$0xff] }
  0x4a   : > { %307 = vst [vmem:[%s3332_s23 + $0x1f0] sm:$0xff] %v306_v62  ;;  %309 = vst [vmem:[%s3332_s23 + $0x1f8] sm:$0xff] %v308_v63 }
  0x4b PF: > { %315 = sbr.rel (!%p3302_p9) target bundleno = 149 (0x95), region = 43  ;;  %s317_s28 = sand.u32 (%p3302_p9), 1, %s3170_s15  }
  0x4c   : > { %s2717_s7 = sshll.u32 (%p3302_p9), %s3190_s20, 3  ;;  %s2715_s11 = sshll.u32 (%p3302_p9), %s317_s28, 10 }
  0x4d   : > { %s2925_s26 = sshll.u32 (%p3302_p9), %s3194_s21, 9  ;;  %s4173_s1 = sld [smem:[#allocation8_spill]] (%p3302_p9) }
  0x4e   : > { %s323_s27 = sadd.s32 (%p3302_p9), %s2925_s26, %s2717_s7  ;;  %s3472_s6 = scalar_lea.vmem (%p3302_p9), [#allocation4], %s2715_s11 }
  0x4f   : > { %s2719_s29 = sshll.u32 (%p3302_p9), %s323_s27, 2 }
  0x53   : > { %s3467_s25 = scalar_lea.vmem %s4173_s1, %s2719_s29 }
  0x54   : > { %v338_v0 = vld [vmem:[%s3467_s25] sm:$0xff]  ;;  %v340_v1 = vld [vmem:[%s3467_s25 + $0x8] sm:$0xff]  ;;  %v342_v2 = vld [vmem:[%s3467_s25 + $0x10] sm:$0xff] }
  0x55   : > { %339 = vst [vmem:[%s3472_s6] sm:$0xff] %v338_v0  ;;  %341 = vst [vmem:[%s3472_s6 + $0x8] sm:$0xff] %v340_v1  ;;  %v344_v3 = vld [vmem:[%s3467_s25 + $0x18] sm:$0xff]  ;;  %v346_v4 = vld [vmem:[%s3467_s25 + $0x40] sm:$0xff] }
  0x56   : > { %343 = vst [vmem:[%s3472_s6 + $0x10] sm:$0xff] %v342_v2  ;;  %v348_v5 = vld [vmem:[%s3467_s25 + $0x48] sm:$0xff]  ;;  %345 = vst [vmem:[%s3472_s6 + $0x18] sm:$0xff] %v344_v3  ;;  %v350_v6 = vld [vmem:[%s3467_s25 + $0x50] sm:$0xff] }
  0x57   : > { %347 = vst [vmem:[%s3472_s6 + $0x20] sm:$0xff] %v346_v4  ;;  %349 = vst [vmem:[%s3472_s6 + $0x28] sm:$0xff] %v348_v5  ;;  %v352_v7 = vld [vmem:[%s3467_s25 + $0x58] sm:$0xff]  ;;  %v354_v8 = vld [vmem:[%s3467_s25 + $0x80] sm:$0xff] }
  0x58   : > { %351 = vst [vmem:[%s3472_s6 + $0x30] sm:$0xff] %v350_v6  ;;  %353 = vst [vmem:[%s3472_s6 + $0x38] sm:$0xff] %v352_v7  ;;  %v356_v9 = vld [vmem:[%s3467_s25 + $0x88] sm:$0xff]  ;;  %v358_v10 = vld [vmem:[%s3467_s25 + $0x90] sm:$0xff] }
  0x59   : > { %355 = vst [vmem:[%s3472_s6 + $0x40] sm:$0xff] %v354_v8  ;;  %v360_v11 = vld [vmem:[%s3467_s25 + $0x98] sm:$0xff]  ;;  %357 = vst [vmem:[%s3472_s6 + $0x48] sm:$0xff] %v356_v9  ;;  %v362_v12 = vld [vmem:[%s3467_s25 + $0xc0] sm:$0xff] }
  0x5a   : > { %359 = vst [vmem:[%s3472_s6 + $0x50] sm:$0xff] %v358_v10  ;;  %361 = vst [vmem:[%s3472_s6 + $0x58] sm:$0xff] %v360_v11  ;;  %v364_v13 = vld [vmem:[%s3467_s25 + $0xc8] sm:$0xff]  ;;  %v366_v14 = vld [vmem:[%s3467_s25 + $0xd0] sm:$0xff] }
  0x5b   : > { %363 = vst [vmem:[%s3472_s6 + $0x60] sm:$0xff] %v362_v12  ;;  %365 = vst [vmem:[%s3472_s6 + $0x68] sm:$0xff] %v364_v13  ;;  %v368_v15 = vld [vmem:[%s3467_s25 + $0xd8] sm:$0xff]  ;;  %v370_v16 = vld [vmem:[%s3467_s25 + $0x100] sm:$0xff] }
  0x5c   : > { %367 = vst [vmem:[%s3472_s6 + $0x70] sm:$0xff] %v366_v14  ;;  %v372_v17 = vld [vmem:[%s3467_s25 + $0x108] sm:$0xff]  ;;  %369 = vst [vmem:[%s3472_s6 + $0x78] sm:$0xff] %v368_v15  ;;  %v374_v18 = vld [vmem:[%s3467_s25 + $0x110] sm:$0xff] }
  0x5d   : > { %371 = vst [vmem:[%s3472_s6 + $0x80] sm:$0xff] %v370_v16  ;;  %373 = vst [vmem:[%s3472_s6 + $0x88] sm:$0xff] %v372_v17  ;;  %v376_v19 = vld [vmem:[%s3467_s25 + $0x118] sm:$0xff]  ;;  %v378_v20 = vld [vmem:[%s3467_s25 + $0x140] sm:$0xff] }
  0x5e   : > { %375 = vst [vmem:[%s3472_s6 + $0x90] sm:$0xff] %v374_v18  ;;  %377 = vst [vmem:[%s3472_s6 + $0x98] sm:$0xff] %v376_v19  ;;  %v380_v21 = vld [vmem:[%s3467_s25 + $0x148] sm:$0xff]  ;;  %v382_v22 = vld [vmem:[%s3467_s25 + $0x150] sm:$0xff] }
  0x5f   : > { %379 = vst [vmem:[%s3472_s6 + $0xa0] sm:$0xff] %v378_v20  ;;  %v384_v23 = vld [vmem:[%s3467_s25 + $0x158] sm:$0xff]  ;;  %381 = vst [vmem:[%s3472_s6 + $0xa8] sm:$0xff] %v380_v21  ;;  %v386_v24 = vld [vmem:[%s3467_s25 + $0x180] sm:$0xff] }
  0x60   : > { %383 = vst [vmem:[%s3472_s6 + $0xb0] sm:$0xff] %v382_v22  ;;  %385 = vst [vmem:[%s3472_s6 + $0xb8] sm:$0xff] %v384_v23  ;;  %v388_v25 = vld [vmem:[%s3467_s25 + $0x188] sm:$0xff]  ;;  %v390_v26 = vld [vmem:[%s3467_s25 + $0x190] sm:$0xff] }
  0x61   : > { %387 = vst [vmem:[%s3472_s6 + $0xc0] sm:$0xff] %v386_v24  ;;  %389 = vst [vmem:[%s3472_s6 + $0xc8] sm:$0xff] %v388_v25  ;;  %v392_v27 = vld [vmem:[%s3467_s25 + $0x198] sm:$0xff]  ;;  %v394_v28 = vld [vmem:[%s3467_s25 + $0x1c0] sm:$0xff] }
  0x62   : > { %391 = vst [vmem:[%s3472_s6 + $0xd0] sm:$0xff] %v390_v26  ;;  %v396_v29 = vld [vmem:[%s3467_s25 + $0x1c8] sm:$0xff]  ;;  %393 = vst [vmem:[%s3472_s6 + $0xd8] sm:$0xff] %v392_v27  ;;  %v398_v30 = vld [vmem:[%s3467_s25 + $0x1d0] sm:$0xff] }
  0x63   : > { %395 = vst [vmem:[%s3472_s6 + $0xe0] sm:$0xff] %v394_v28  ;;  %397 = vst [vmem:[%s3472_s6 + $0xe8] sm:$0xff] %v396_v29  ;;  %v400_v31 = vld [vmem:[%s3467_s25 + $0x1d8] sm:$0xff]  ;;  %v402_v32 = vld [vmem:[%s3467_s25 + $0x200] sm:$0xff] }
  0x64   : > { %399 = vst [vmem:[%s3472_s6 + $0xf0] sm:$0xff] %v398_v30  ;;  %401 = vst [vmem:[%s3472_s6 + $0xf8] sm:$0xff] %v400_v31  ;;  %v404_v33 = vld [vmem:[%s3467_s25 + $0x208] sm:$0xff]  ;;  %v406_v34 = vld [vmem:[%s3467_s25 + $0x210] sm:$0xff] }
  0x65   : > { %403 = vst [vmem:[%s3472_s6 + $0x100] sm:$0xff] %v402_v32  ;;  %v408_v35 = vld [vmem:[%s3467_s25 + $0x218] sm:$0xff]  ;;  %405 = vst [vmem:[%s3472_s6 + $0x108] sm:$0xff] %v404_v33  ;;  %v410_v36 = vld [vmem:[%s3467_s25 + $0x240] sm:$0xff] }
  0x66   : > { %407 = vst [vmem:[%s3472_s6 + $0x110] sm:$0xff] %v406_v34  ;;  %409 = vst [vmem:[%s3472_s6 + $0x118] sm:$0xff] %v408_v35  ;;  %v412_v37 = vld [vmem:[%s3467_s25 + $0x248] sm:$0xff]  ;;  %v414_v38 = vld [vmem:[%s3467_s25 + $0x250] sm:$0xff] }
  0x67   : > { %411 = vst [vmem:[%s3472_s6 + $0x120] sm:$0xff] %v410_v36  ;;  %413 = vst [vmem:[%s3472_s6 + $0x128] sm:$0xff] %v412_v37  ;;  %v416_v39 = vld [vmem:[%s3467_s25 + $0x258] sm:$0xff]  ;;  %v418_v40 = vld [vmem:[%s3467_s25 + $0x280] sm:$0xff] }
  0x68   : > { %415 = vst [vmem:[%s3472_s6 + $0x130] sm:$0xff] %v414_v38  ;;  %v420_v41 = vld [vmem:[%s3467_s25 + $0x288] sm:$0xff]  ;;  %417 = vst [vmem:[%s3472_s6 + $0x138] sm:$0xff] %v416_v39  ;;  %v422_v42 = vld [vmem:[%s3467_s25 + $0x290] sm:$0xff] }
  0x69   : > { %419 = vst [vmem:[%s3472_s6 + $0x140] sm:$0xff] %v418_v40  ;;  %421 = vst [vmem:[%s3472_s6 + $0x148] sm:$0xff] %v420_v41  ;;  %v424_v43 = vld [vmem:[%s3467_s25 + $0x298] sm:$0xff]  ;;  %v426_v44 = vld [vmem:[%s3467_s25 + $0x2c0] sm:$0xff] }
  0x6a   : > { %423 = vst [vmem:[%s3472_s6 + $0x150] sm:$0xff] %v422_v42  ;;  %425 = vst [vmem:[%s3472_s6 + $0x158] sm:$0xff] %v424_v43  ;;  %v428_v45 = vld [vmem:[%s3467_s25 + $0x2c8] sm:$0xff]  ;;  %v430_v46 = vld [vmem:[%s3467_s25 + $0x2d0] sm:$0xff] }
  0x6b   : > { %427 = vst [vmem:[%s3472_s6 + $0x160] sm:$0xff] %v426_v44  ;;  %v432_v47 = vld [vmem:[%s3467_s25 + $0x2d8] sm:$0xff]  ;;  %429 = vst [vmem:[%s3472_s6 + $0x168] sm:$0xff] %v428_v45  ;;  %v434_v48 = vld [vmem:[%s3467_s25 + $0x300] sm:$0xff] }
  0x6c   : > { %431 = vst [vmem:[%s3472_s6 + $0x170] sm:$0xff] %v430_v46  ;;  %433 = vst [vmem:[%s3472_s6 + $0x178] sm:$0xff] %v432_v47  ;;  %v436_v49 = vld [vmem:[%s3467_s25 + $0x308] sm:$0xff]  ;;  %v438_v50 = vld [vmem:[%s3467_s25 + $0x310] sm:$0xff] }
  0x6d   : > { %435 = vst [vmem:[%s3472_s6 + $0x180] sm:$0xff] %v434_v48  ;;  %437 = vst [vmem:[%s3472_s6 + $0x188] sm:$0xff] %v436_v49  ;;  %v440_v51 = vld [vmem:[%s3467_s25 + $0x318] sm:$0xff]  ;;  %v442_v52 = vld [vmem:[%s3467_s25 + $0x340] sm:$0xff] }
  0x6e   : > { %439 = vst [vmem:[%s3472_s6 + $0x190] sm:$0xff] %v438_v50  ;;  %v444_v53 = vld [vmem:[%s3467_s25 + $0x348] sm:$0xff]  ;;  %441 = vst [vmem:[%s3472_s6 + $0x198] sm:$0xff] %v440_v51  ;;  %v446_v54 = vld [vmem:[%s3467_s25 + $0x350] sm:$0xff] }
  0x6f   : > { %443 = vst [vmem:[%s3472_s6 + $0x1a0] sm:$0xff] %v442_v52  ;;  %445 = vst [vmem:[%s3472_s6 + $0x1a8] sm:$0xff] %v444_v53  ;;  %v448_v55 = vld [vmem:[%s3467_s25 + $0x358] sm:$0xff]  ;;  %v450_v56 = vld [vmem:[%s3467_s25 + $0x380] sm:$0xff] }
  0x70   : > { %447 = vst [vmem:[%s3472_s6 + $0x1b0] sm:$0xff] %v446_v54  ;;  %449 = vst [vmem:[%s3472_s6 + $0x1b8] sm:$0xff] %v448_v55  ;;  %v452_v57 = vld [vmem:[%s3467_s25 + $0x388] sm:$0xff]  ;;  %v454_v58 = vld [vmem:[%s3467_s25 + $0x390] sm:$0xff] }
  0x71   : > { %451 = vst [vmem:[%s3472_s6 + $0x1c0] sm:$0xff] %v450_v56  ;;  %v456_v59 = vld [vmem:[%s3467_s25 + $0x398] sm:$0xff]  ;;  %453 = vst [vmem:[%s3472_s6 + $0x1c8] sm:$0xff] %v452_v57  ;;  %v458_v60 = vld [vmem:[%s3467_s25 + $0x3c0] sm:$0xff] }
  0x72   : > { %455 = vst [vmem:[%s3472_s6 + $0x1d0] sm:$0xff] %v454_v58  ;;  %457 = vst [vmem:[%s3472_s6 + $0x1d8] sm:$0xff] %v456_v59  ;;  %v460_v61 = vld [vmem:[%s3467_s25 + $0x3c8] sm:$0xff]  ;;  %v462_v62 = vld [vmem:[%s3467_s25 + $0x3d0] sm:$0xff] }
  0x73   : > { %459 = vst [vmem:[%s3472_s6 + $0x1e0] sm:$0xff] %v458_v60  ;;  %461 = vst [vmem:[%s3472_s6 + $0x1e8] sm:$0xff] %v460_v61  ;;  %v464_v63 = vld [vmem:[%s3467_s25 + $0x3d8] sm:$0xff]  ;;  %v466_v0 = vld [vmem:[%s3467_s25 + $0x400] sm:$0xff] }
  0x74   : > { %463 = vst [vmem:[%s3472_s6 + $0x1f0] sm:$0xff] %v462_v62  ;;  %v468_v1 = vld [vmem:[%s3467_s25 + $0x408] sm:$0xff]  ;;  %465 = vst [vmem:[%s3472_s6 + $0x1f8] sm:$0xff] %v464_v63  ;;  %v470_v2 = vld [vmem:[%s3467_s25 + $0x410] sm:$0xff] }
  0x75   : > { %467 = vst [vmem:[%s3472_s6 + $0x200] sm:$0xff] %v466_v0  ;;  %469 = vst [vmem:[%s3472_s6 + $0x208] sm:$0xff] %v468_v1  ;;  %v472_v3 = vld [vmem:[%s3467_s25 + $0x418] sm:$0xff]  ;;  %v474_v4 = vld [vmem:[%s3467_s25 + $0x440] sm:$0xff] }
  0x76   : > { %471 = vst [vmem:[%s3472_s6 + $0x210] sm:$0xff] %v470_v2  ;;  %473 = vst [vmem:[%s3472_s6 + $0x218] sm:$0xff] %v472_v3  ;;  %v476_v5 = vld [vmem:[%s3467_s25 + $0x448] sm:$0xff]  ;;  %v478_v6 = vld [vmem:[%s3467_s25 + $0x450] sm:$0xff] }
  0x77   : > { %475 = vst [vmem:[%s3472_s6 + $0x220] sm:$0xff] %v474_v4  ;;  %v480_v7 = vld [vmem:[%s3467_s25 + $0x458] sm:$0xff]  ;;  %477 = vst [vmem:[%s3472_s6 + $0x228] sm:$0xff] %v476_v5  ;;  %v482_v8 = vld [vmem:[%s3467_s25 + $0x480] sm:$0xff] }
  0x78   : > { %479 = vst [vmem:[%s3472_s6 + $0x230] sm:$0xff] %v478_v6  ;;  %481 = vst [vmem:[%s3472_s6 + $0x238] sm:$0xff] %v480_v7  ;;  %v484_v9 = vld [vmem:[%s3467_s25 + $0x488] sm:$0xff]  ;;  %v486_v10 = vld [vmem:[%s3467_s25 + $0x490] sm:$0xff] }
  0x79   : > { %483 = vst [vmem:[%s3472_s6 + $0x240] sm:$0xff] %v482_v8  ;;  %485 = vst [vmem:[%s3472_s6 + $0x248] sm:$0xff] %v484_v9  ;;  %v488_v11 = vld [vmem:[%s3467_s25 + $0x498] sm:$0xff]  ;;  %v490_v12 = vld [vmem:[%s3467_s25 + $0x4c0] sm:$0xff] }
  0x7a   : > { %487 = vst [vmem:[%s3472_s6 + $0x250] sm:$0xff] %v486_v10  ;;  %v492_v13 = vld [vmem:[%s3467_s25 + $0x4c8] sm:$0xff]  ;;  %489 = vst [vmem:[%s3472_s6 + $0x258] sm:$0xff] %v488_v11  ;;  %v494_v14 = vld [vmem:[%s3467_s25 + $0x4d0] sm:$0xff] }
  0x7b   : > { %491 = vst [vmem:[%s3472_s6 + $0x260] sm:$0xff] %v490_v12  ;;  %493 = vst [vmem:[%s3472_s6 + $0x268] sm:$0xff] %v492_v13  ;;  %v496_v15 = vld [vmem:[%s3467_s25 + $0x4d8] sm:$0xff]  ;;  %v498_v16 = vld [vmem:[%s3467_s25 + $0x500] sm:$0xff] }
  0x7c   : > { %495 = vst [vmem:[%s3472_s6 + $0x270] sm:$0xff] %v494_v14  ;;  %497 = vst [vmem:[%s3472_s6 + $0x278] sm:$0xff] %v496_v15  ;;  %v500_v17 = vld [vmem:[%s3467_s25 + $0x508] sm:$0xff]  ;;  %v502_v18 = vld [vmem:[%s3467_s25 + $0x510] sm:$0xff] }
  0x7d   : > { %499 = vst [vmem:[%s3472_s6 + $0x280] sm:$0xff] %v498_v16  ;;  %v504_v19 = vld [vmem:[%s3467_s25 + $0x518] sm:$0xff]  ;;  %501 = vst [vmem:[%s3472_s6 + $0x288] sm:$0xff] %v500_v17  ;;  %v506_v20 = vld [vmem:[%s3467_s25 + $0x540] sm:$0xff] }
  0x7e   : > { %503 = vst [vmem:[%s3472_s6 + $0x290] sm:$0xff] %v502_v18  ;;  %505 = vst [vmem:[%s3472_s6 + $0x298] sm:$0xff] %v504_v19  ;;  %v508_v21 = vld [vmem:[%s3467_s25 + $0x548] sm:$0xff]  ;;  %v510_v22 = vld [vmem:[%s3467_s25 + $0x550] sm:$0xff] }
  0x7f   : > { %507 = vst [vmem:[%s3472_s6 + $0x2a0] sm:$0xff] %v506_v20  ;;  %509 = vst [vmem:[%s3472_s6 + $0x2a8] sm:$0xff] %v508_v21  ;;  %v512_v23 = vld [vmem:[%s3467_s25 + $0x558] sm:$0xff]  ;;  %v514_v24 = vld [vmem:[%s3467_s25 + $0x580] sm:$0xff] }
  0x80   : > { %511 = vst [vmem:[%s3472_s6 + $0x2b0] sm:$0xff] %v510_v22  ;;  %v516_v25 = vld [vmem:[%s3467_s25 + $0x588] sm:$0xff]  ;;  %513 = vst [vmem:[%s3472_s6 + $0x2b8] sm:$0xff] %v512_v23  ;;  %v518_v26 = vld [vmem:[%s3467_s25 + $0x590] sm:$0xff] }
  0x81   : > { %515 = vst [vmem:[%s3472_s6 + $0x2c0] sm:$0xff] %v514_v24  ;;  %517 = vst [vmem:[%s3472_s6 + $0x2c8] sm:$0xff] %v516_v25  ;;  %v520_v27 = vld [vmem:[%s3467_s25 + $0x598] sm:$0xff]  ;;  %v522_v28 = vld [vmem:[%s3467_s25 + $0x5c0] sm:$0xff] }
  0x82   : > { %519 = vst [vmem:[%s3472_s6 + $0x2d0] sm:$0xff] %v518_v26  ;;  %521 = vst [vmem:[%s3472_s6 + $0x2d8] sm:$0xff] %v520_v27  ;;  %v524_v29 = vld [vmem:[%s3467_s25 + $0x5c8] sm:$0xff]  ;;  %v526_v30 = vld [vmem:[%s3467_s25 + $0x5d0] sm:$0xff] }
  0x83   : > { %523 = vst [vmem:[%s3472_s6 + $0x2e0] sm:$0xff] %v522_v28  ;;  %v528_v31 = vld [vmem:[%s3467_s25 + $0x5d8] sm:$0xff]  ;;  %525 = vst [vmem:[%s3472_s6 + $0x2e8] sm:$0xff] %v524_v29  ;;  %v530_v32 = vld [vmem:[%s3467_s25 + $0x600] sm:$0xff] }
  0x84   : > { %527 = vst [vmem:[%s3472_s6 + $0x2f0] sm:$0xff] %v526_v30  ;;  %529 = vst [vmem:[%s3472_s6 + $0x2f8] sm:$0xff] %v528_v31  ;;  %v532_v33 = vld [vmem:[%s3467_s25 + $0x608] sm:$0xff]  ;;  %v534_v34 = vld [vmem:[%s3467_s25 + $0x610] sm:$0xff] }
  0x85   : > { %531 = vst [vmem:[%s3472_s6 + $0x300] sm:$0xff] %v530_v32  ;;  %533 = vst [vmem:[%s3472_s6 + $0x308] sm:$0xff] %v532_v33  ;;  %v536_v35 = vld [vmem:[%s3467_s25 + $0x618] sm:$0xff]  ;;  %v538_v36 = vld [vmem:[%s3467_s25 + $0x640] sm:$0xff] }
  0x86   : > { %535 = vst [vmem:[%s3472_s6 + $0x310] sm:$0xff] %v534_v34  ;;  %v540_v37 = vld [vmem:[%s3467_s25 + $0x648] sm:$0xff]  ;;  %537 = vst [vmem:[%s3472_s6 + $0x318] sm:$0xff] %v536_v35  ;;  %v542_v38 = vld [vmem:[%s3467_s25 + $0x650] sm:$0xff] }
  0x87   : > { %539 = vst [vmem:[%s3472_s6 + $0x320] sm:$0xff] %v538_v36  ;;  %541 = vst [vmem:[%s3472_s6 + $0x328] sm:$0xff] %v540_v37  ;;  %v544_v39 = vld [vmem:[%s3467_s25 + $0x658] sm:$0xff]  ;;  %v546_v40 = vld [vmem:[%s3467_s25 + $0x680] sm:$0xff] }
  0x88   : > { %543 = vst [vmem:[%s3472_s6 + $0x330] sm:$0xff] %v542_v38  ;;  %545 = vst [vmem:[%s3472_s6 + $0x338] sm:$0xff] %v544_v39  ;;  %v548_v41 = vld [vmem:[%s3467_s25 + $0x688] sm:$0xff]  ;;  %v550_v42 = vld [vmem:[%s3467_s25 + $0x690] sm:$0xff] }
  0x89   : > { %547 = vst [vmem:[%s3472_s6 + $0x340] sm:$0xff] %v546_v40  ;;  %v552_v43 = vld [vmem:[%s3467_s25 + $0x698] sm:$0xff]  ;;  %549 = vst [vmem:[%s3472_s6 + $0x348] sm:$0xff] %v548_v41  ;;  %v554_v44 = vld [vmem:[%s3467_s25 + $0x6c0] sm:$0xff] }
  0x8a   : > { %551 = vst [vmem:[%s3472_s6 + $0x350] sm:$0xff] %v550_v42  ;;  %553 = vst [vmem:[%s3472_s6 + $0x358] sm:$0xff] %v552_v43  ;;  %v556_v45 = vld [vmem:[%s3467_s25 + $0x6c8] sm:$0xff]  ;;  %v558_v46 = vld [vmem:[%s3467_s25 + $0x6d0] sm:$0xff] }
  0x8b   : > { %555 = vst [vmem:[%s3472_s6 + $0x360] sm:$0xff] %v554_v44  ;;  %557 = vst [vmem:[%s3472_s6 + $0x368] sm:$0xff] %v556_v45  ;;  %v560_v47 = vld [vmem:[%s3467_s25 + $0x6d8] sm:$0xff]  ;;  %v562_v48 = vld [vmem:[%s3467_s25 + $0x700] sm:$0xff] }
  0x8c   : > { %559 = vst [vmem:[%s3472_s6 + $0x370] sm:$0xff] %v558_v46  ;;  %v564_v49 = vld [vmem:[%s3467_s25 + $0x708] sm:$0xff]  ;;  %561 = vst [vmem:[%s3472_s6 + $0x378] sm:$0xff] %v560_v47  ;;  %v566_v50 = vld [vmem:[%s3467_s25 + $0x710] sm:$0xff] }
  0x8d   : > { %563 = vst [vmem:[%s3472_s6 + $0x380] sm:$0xff] %v562_v48  ;;  %565 = vst [vmem:[%s3472_s6 + $0x388] sm:$0xff] %v564_v49  ;;  %v568_v51 = vld [vmem:[%s3467_s25 + $0x718] sm:$0xff]  ;;  %v570_v52 = vld [vmem:[%s3467_s25 + $0x740] sm:$0xff] }
  0x8e   : > { %567 = vst [vmem:[%s3472_s6 + $0x390] sm:$0xff] %v566_v50  ;;  %569 = vst [vmem:[%s3472_s6 + $0x398] sm:$0xff] %v568_v51  ;;  %v572_v53 = vld [vmem:[%s3467_s25 + $0x748] sm:$0xff]  ;;  %v574_v54 = vld [vmem:[%s3467_s25 + $0x750] sm:$0xff] }
  0x8f   : > { %571 = vst [vmem:[%s3472_s6 + $0x3a0] sm:$0xff] %v570_v52  ;;  %v576_v55 = vld [vmem:[%s3467_s25 + $0x758] sm:$0xff]  ;;  %573 = vst [vmem:[%s3472_s6 + $0x3a8] sm:$0xff] %v572_v53  ;;  %v578_v56 = vld [vmem:[%s3467_s25 + $0x780] sm:$0xff] }
  0x90   : > { %575 = vst [vmem:[%s3472_s6 + $0x3b0] sm:$0xff] %v574_v54  ;;  %577 = vst [vmem:[%s3472_s6 + $0x3b8] sm:$0xff] %v576_v55  ;;  %v580_v57 = vld [vmem:[%s3467_s25 + $0x788] sm:$0xff]  ;;  %v582_v58 = vld [vmem:[%s3467_s25 + $0x790] sm:$0xff] }
  0x91   : > { %579 = vst [vmem:[%s3472_s6 + $0x3c0] sm:$0xff] %v578_v56  ;;  %581 = vst [vmem:[%s3472_s6 + $0x3c8] sm:$0xff] %v580_v57  ;;  %v584_v59 = vld [vmem:[%s3467_s25 + $0x798] sm:$0xff]  ;;  %v586_v60 = vld [vmem:[%s3467_s25 + $0x7c0] sm:$0xff] }
  0x92   : > { %583 = vst [vmem:[%s3472_s6 + $0x3d0] sm:$0xff] %v582_v58  ;;  %v588_v61 = vld [vmem:[%s3467_s25 + $0x7c8] sm:$0xff]  ;;  %585 = vst [vmem:[%s3472_s6 + $0x3d8] sm:$0xff] %v584_v59  ;;  %v590_v62 = vld [vmem:[%s3467_s25 + $0x7d0] sm:$0xff] }
  0x93   : > { %587 = vst [vmem:[%s3472_s6 + $0x3e0] sm:$0xff] %v586_v60  ;;  %589 = vst [vmem:[%s3472_s6 + $0x3e8] sm:$0xff] %v588_v61  ;;  %v592_v63 = vld [vmem:[%s3467_s25 + $0x7d8] sm:$0xff] }
  0x94   : > { %591 = vst [vmem:[%s3472_s6 + $0x3f0] sm:$0xff] %v590_v62  ;;  %593 = vst [vmem:[%s3472_s6 + $0x3f8] sm:$0xff] %v592_v63 }
  0x95 PF: > { %p2720_p0 = scmp.ge.s32.totalorder %s3198_s22, 1  ;;  %p606_p1 = scmp.lt.s32.totalorder %s3198_s22, 5 }
  0x97   : > { %p607_p2 = pnand %p2720_p0, %p606_p1 }
  0x98   : > { %s613_s0 = sand.u32 (!%p607_p2), 1, %s3174_s16   ;;  %s620_s5 = sand.u32 (!%p607_p2), 1, %s3166_s14  }
  0x99   : > { %610 = sbr.rel (%p607_p2) target bundleno = 742 (0x2e6), region = 70  ;;  %s2721_s23 = sshll.u32 (!%p607_p2), %s613_s0, 9 }
  0x9a   : > { %s2722_s28 = sshll.u32 (!%p607_p2), %s620_s5, 10  ;;  %s647_s7 = sand.u32 (!%p607_p2), 1, %s3158_s12  }
  0x9b   : > { %s2724_s25 = sshll.u32 (!%p607_p2), %s3186_s19, 1  ;;  %s2723_s11 = sshll.u32 (!%p607_p2), %s647_s7, 8 }
  0x9c   : > { %p655_p3 = scmp.lt.s32.totalorder (!%p607_p2), %s2724_s25, 3  ;;  %s3739_s4 = scalar_lea.vmem (!%p607_p2), [#allocation3], %s2721_s23 }
  0x9d   : > { %s3741_s6 = scalar_lea.vmem (!%p607_p2), [#allocation4], %s2722_s28  ;;  %s3743_s1 = scalar_lea.vmem (!%p607_p2), [#allocation5], %s2723_s11 }
  0x9e   : > { %p2725_p4 = scmp.ne.s32.totalorder (!%p607_p2), %s3182_s18, 0 }
  0xa0   : > { %s4192_s25 = smov (!%p655_p3, %s2724_s25), 3  ;;  %664 = sbr.rel (%p2725_p4) target bundleno = 178 (0xb2), region = 82 }
  0xa1   : > { %s657_s29 = scalar_lea.vmem %s4163_s2, %s4192_s25  ;;  %v3200_v0 = vmov (!%p2725_p4), 0.0  }
  0xa2   : > { %665 = vst [vmem:[#allocation2] sm:$0xff] (!%p2725_p4), %v3200_v0  ;;  %666 = vst [vmem:[#allocation2 + $0x8] sm:$0xff] (!%p2725_p4), %v3200_v0 }
  0xa3   : > { %667 = vst [vmem:[#allocation2 + $0x10] sm:$0xff] (!%p2725_p4), %v3200_v0  ;;  %668 = vst [vmem:[#allocation2 + $0x18] sm:$0xff] (!%p2725_p4), %v3200_v0 }
  0xa4   : > { %669 = vst [vmem:[#allocation2 + $0x20] sm:$0xff] (!%p2725_p4), %v3200_v0  ;;  %670 = vst [vmem:[#allocation2 + $0x28] sm:$0xff] (!%p2725_p4), %v3200_v0 }
  0xa5   : > { %671 = vst [vmem:[#allocation2 + $0x30] sm:$0xff] (!%p2725_p4), %v3200_v0  ;;  %672 = vst [vmem:[#allocation2 + $0x38] sm:$0xff] (!%p2725_p4), %v3200_v0 }
  0xa6   : > { %673 = vst [vmem:[#allocation2 + $0x40] sm:$0xff] (!%p2725_p4), %v3200_v0  ;;  %674 = vst [vmem:[#allocation2 + $0x48] sm:$0xff] (!%p2725_p4), %v3200_v0 }
  0xa7   : > { %675 = vst [vmem:[#allocation2 + $0x50] sm:$0xff] %v3200_v0  ;;  %676 = vst [vmem:[#allocation2 + $0x58] sm:$0xff] %v3200_v0 }
  0xa8   : > { %677 = vst [vmem:[#allocation2 + $0x60] sm:$0xff] %v3200_v0  ;;  %678 = vst [vmem:[#allocation2 + $0x68] sm:$0xff] %v3200_v0 }
  0xa9   : > { %679 = vst [vmem:[#allocation2 + $0x70] sm:$0xff] %v3200_v0  ;;  %680 = vst [vmem:[#allocation2 + $0x78] sm:$0xff] %v3200_v0 }
  0xaa   : > { %681 = vst [vmem:[#allocation2 + $0x80] sm:$0xff] %v3200_v0  ;;  %682 = vst [vmem:[#allocation2 + $0x88] sm:$0xff] %v3200_v0 }
  0xab   : > { %683 = vst [vmem:[#allocation2 + $0x90] sm:$0xff] %v3200_v0  ;;  %684 = vst [vmem:[#allocation2 + $0x98] sm:$0xff] %v3200_v0 }
  0xac   : > { %685 = vst [vmem:[#allocation2 + $0xa0] sm:$0xff] %v3200_v0  ;;  %686 = vst [vmem:[#allocation2 + $0xa8] sm:$0xff] %v3200_v0 }
  0xad   : > { %687 = vst [vmem:[#allocation2 + $0xb0] sm:$0xff] %v3200_v0  ;;  %688 = vst [vmem:[#allocation2 + $0xb8] sm:$0xff] %v3200_v0 }
  0xae   : > { %689 = vst [vmem:[#allocation2 + $0xc0] sm:$0xff] %v3200_v0  ;;  %690 = vst [vmem:[#allocation2 + $0xc8] sm:$0xff] %v3200_v0 }
  0xaf   : > { %691 = vst [vmem:[#allocation2 + $0xd0] sm:$0xff] %v3200_v0  ;;  %692 = vst [vmem:[#allocation2 + $0xd8] sm:$0xff] %v3200_v0 }
  0xb0   : > { %693 = vst [vmem:[#allocation2 + $0xe0] sm:$0xff] %v3200_v0  ;;  %694 = vst [vmem:[#allocation2 + $0xe8] sm:$0xff] %v3200_v0 }
  0xb1   : > { %695 = vst [vmem:[#allocation2 + $0xf0] sm:$0xff] %v3200_v0  ;;  %696 = vst [vmem:[#allocation2 + $0xf8] sm:$0xff] %v3200_v0 }
  0xb2 PF: > { %v793_v1 = vld [vmem:[%s3741_s6] sm:$0xff]  ;;  %v795_v3 = vld [vmem:[%s3741_s6 + $0x10] sm:$0xff]  ;;  %p2918_p5 = scmp.ne.s32.totalorder %s3182_s18, 1 }
  0xb3   : > { %v797_v2 = vld [vmem:[%s3741_s6 + $0x20] sm:$0xff]  ;;  %v799_v5 = vld [vmem:[%s3741_s6 + $0x30] sm:$0xff] }
  0xb4   : > { %v2791_v4 = vcombine.high %v793_v1, %v797_v2  ;;  %v2790_v6 = vcombine.low %v793_v1, %v797_v2  ;;  %v801_v7 = vld [vmem:[%s3741_s6 + $0x40] sm:$0xff]  ;;  %v2795_v9 = vcombine.high %v795_v3, %v799_v5  ;;  %v2794_v10 = vcombine.low %v795_v3, %v799_v5  ;;  %v803_v12 = vld [vmem:[%s3741_s6 + $0x50] sm:$0xff] }
  0xb5   : > { %v805_v8 = vld [vmem:[%s3741_s6 + $0x60] sm:$0xff]  ;;  %v807_v13 = vld [vmem:[%s3741_s6 + $0x70] sm:$0xff] }
  0xb6   : > { %v2799_v11 = vcombine.high %v801_v7, %v805_v8  ;;  %1881 = vmatprep.subr.bf16.mxu1 %v2791_v4  ;;  %v2803_v14 = vcombine.high %v803_v12, %v807_v13  ;;  %2107 = vmatprep.subr.bf16.mxu0 %v2795_v9  ;;  %v809_v15 = vld [vmem:[%s3741_s6 + $0x80] sm:$0xff]  ;;  %v811_v17 = vld [vmem:[%s3741_s6 + $0x90] sm:$0xff]  ;;  %v2798_v19 = vcombine.low %v801_v7, %v805_v8 }
  0xb7   : > { %1882 = vmatpush1.bf16.xpose.msra.mxu1 %v2790_v6  ;;  %2108 = vmatpush1.bf16.xpose.msra.mxu0 %v2794_v10  ;;  %v813_v16 = vld [vmem:[%s3741_s6 + $0xa0] sm:$0xff]  ;;  %v815_v18 = vld [vmem:[%s3741_s6 + $0xb0] sm:$0xff]  ;;  %v2802_v20 = vcombine.low %v803_v12, %v807_v13 }
  0xb8   : > { %1883 = vmatprep.subr.bf16.mxu1 %v2799_v11  ;;  %2109 = vmatprep.subr.bf16.mxu0 %v2803_v14  ;;  %v2807_v21 = vcombine.high %v809_v15, %v813_v16  ;;  %v2811_v22 = vcombine.high %v811_v17, %v815_v18  ;;  %v817_v23 = vld [vmem:[%s3741_s6 + $0xc0] sm:$0xff]  ;;  %v819_v25 = vld [vmem:[%s3741_s6 + $0xd0] sm:$0xff]  ;;  %v2806_v27 = vcombine.low %v809_v15, %v813_v16 }
  0xb9   : > { %v821_v24 = vld [vmem:[%s3741_s6 + $0xe0] sm:$0xff]  ;;  %v823_v26 = vld [vmem:[%s3741_s6 + $0xf0] sm:$0xff]  ;;  %v2810_v28 = vcombine.low %v811_v17, %v815_v18 }
  0xba   : > { %v2815_v29 = vcombine.high %v817_v23, %v821_v24  ;;  %v2819_v30 = vcombine.high %v819_v25, %v823_v26  ;;  %v3763_v31 = vld [vmem:[%s3739_s4] sm:$0xff]  ;;  %v3775_v37 = vld [vmem:[%s3739_s4 + $0x10] sm:$0xff]  ;;  %v2814_v41 = vcombine.low %v817_v23, %v821_v24  ;;  %v2818_v44 = vcombine.low %v819_v25, %v823_v26 }
  0xbb   : > { %v3766_v32 = vld [vmem:[%s3739_s4 + $0x20] sm:$0xff]  ;;  %v827_v38 = vld [vmem:[%s3741_s6 + $0x110] sm:$0xff] }
  0xbc   : > { %v825_v33 = vld [vmem:[%s3741_s6 + $0x100] sm:$0xff]  ;;  %v2726_v35 = vcombine.low %v3763_v31, %v3766_v32  ;;  %v2727_v36 = vcombine.high %v3763_v31, %v3766_v32  ;;  %v831_v39 = vld [vmem:[%s3741_s6 + $0x130] sm:$0xff] }
  0xbd   : > { %v829_v34 = vld [vmem:[%s3741_s6 + $0x120] sm:$0xff]  ;;  %v3780_v40 = vld [vmem:[%s3739_s4 + $0x30] sm:$0xff]  ;;  %v2827_v46 = vcombine.high %v827_v38, %v831_v39  ;;  %v2826_v52 = vcombine.low %v827_v38, %v831_v39 }
  0xbe   : > { %1913 = vmatprep.mubr.bf16.mxu1 %v2727_v36  ;;  %v2730_v42 = vcombine.low %v3775_v37, %v3780_v40  ;;  %v2731_v43 = vcombine.high %v3775_v37, %v3780_v40  ;;  %v2823_v45 = vcombine.high %v825_v33, %v829_v34  ;;  %v833_v47 = vld [vmem:[%s3741_s6 + $0x140] sm:$0xff]  ;;  %v835_v49 = vld [vmem:[%s3741_s6 + $0x150] sm:$0xff]  ;;  %v2822_v51 = vcombine.low %v825_v33, %v829_v34 }
  0xbf   : > { %1884 = vmatpush1.bf16.xpose.msra.mxu1 %v2798_v19  ;;  %2110 = vmatpush1.bf16.xpose.msra.mxu0 %v2802_v20  ;;  %v837_v48 = vld [vmem:[%s3741_s6 + $0x160] sm:$0xff]  ;;  %v839_v50 = vld [vmem:[%s3741_s6 + $0x170] sm:$0xff] }
  0xc0   : > { %1885 = vmatprep.subr.bf16.mxu1 %v2807_v21  ;;  %2111 = vmatprep.subr.bf16.mxu0 %v2811_v22  ;;  %v2831_v53 = vcombine.high %v833_v47, %v837_v48  ;;  %v2835_v54 = vcombine.high %v835_v49, %v839_v50  ;;  %v841_v55 = vld [vmem:[%s3741_s6 + $0x180] sm:$0xff]  ;;  %v843_v57 = vld [vmem:[%s3741_s6 + $0x190] sm:$0xff]  ;;  %v2830_v59 = vcombine.low %v833_v47, %v837_v48 }
  0xc1   : > { %2139 = vmatprep.mubr.bf16.mxu0 %v2731_v43  ;;  %v845_v56 = vld [vmem:[%s3741_s6 + $0x1a0] sm:$0xff]  ;;  %v847_v58 = vld [vmem:[%s3741_s6 + $0x1b0] sm:$0xff]  ;;  %v2834_v60 = vcombine.low %v835_v49, %v839_v50 }
  0xc2   : > { %v2839_v61 = vcombine.high %v841_v55, %v845_v56  ;;  %v2843_v62 = vcombine.high %v843_v57, %v847_v58  ;;  %v849_v63 = vld [vmem:[%s3741_s6 + $0x1c0] sm:$0xff]  ;;  %v851_v1 = vld [vmem:[%s3741_s6 + $0x1d0] sm:$0xff]  ;;  %v2838_v3 = vcombine.low %v841_v55, %v845_v56  ;;  %v2842_v4 = vcombine.low %v843_v57, %v847_v58 }
  0xc3   : > { %v853_v0 = vld [vmem:[%s3741_s6 + $0x1e0] sm:$0xff]  ;;  %v855_v2 = vld [vmem:[%s3741_s6 + $0x1f0] sm:$0xff] }
  0xc4   : > { %v2847_v5 = vcombine.high %v849_v63, %v853_v0  ;;  %v2851_v6 = vcombine.high %v851_v1, %v855_v2  ;;  %v857_v7 = vld [vmem:[%s3741_s6 + $0x200] sm:$0xff]  ;;  %v859_v9 = vld [vmem:[%s3741_s6 + $0x210] sm:$0xff]  ;;  %v2846_v11 = vcombine.low %v849_v63, %v853_v0  ;;  %v2850_v12 = vcombine.low %v851_v1, %v855_v2 }
  0xc5   : > { %v861_v8 = vld [vmem:[%s3741_s6 + $0x220] sm:$0xff]  ;;  %v863_v10 = vld [vmem:[%s3741_s6 + $0x230] sm:$0xff] }
  0xc6   : > { %v2855_v13 = vcombine.high %v857_v7, %v861_v8  ;;  %v2859_v14 = vcombine.high %v859_v9, %v863_v10  ;;  %v865_v15 = vld [vmem:[%s3741_s6 + $0x240] sm:$0xff]  ;;  %v867_v17 = vld [vmem:[%s3741_s6 + $0x250] sm:$0xff]  ;;  %v2854_v19 = vcombine.low %v857_v7, %v861_v8  ;;  %v2858_v20 = vcombine.low %v859_v9, %v863_v10 }
  0xc7   : > { %1886 = vmatpush1.bf16.xpose.msra.mxu1 %v2806_v27  ;;  %2112 = vmatpush1.bf16.xpose.msra.mxu0 %v2810_v28  ;;  %v869_v16 = vld [vmem:[%s3741_s6 + $0x260] sm:$0xff]  ;;  %v871_v18 = vld [vmem:[%s3741_s6 + $0x270] sm:$0xff] }
  0xc8   : > { %1887 = vmatprep.subr.bf16.mxu1 %v2815_v29  ;;  %2113 = vmatprep.subr.bf16.mxu0 %v2819_v30  ;;  %v2863_v21 = vcombine.high %v865_v15, %v869_v16  ;;  %v2867_v22 = vcombine.high %v867_v17, %v871_v18  ;;  %v873_v23 = vld [vmem:[%s3741_s6 + $0x280] sm:$0xff]  ;;  %v875_v25 = vld [vmem:[%s3741_s6 + $0x290] sm:$0xff]  ;;  %v2862_v27 = vcombine.low %v865_v15, %v869_v16  ;;  %v796_v15 = vld [vmem:[%s3741_s6 + $0x18] sm:$0xff] }
  0xc9   : > { %v877_v24 = vld [vmem:[%s3741_s6 + $0x2a0] sm:$0xff]  ;;  %v879_v26 = vld [vmem:[%s3741_s6 + $0x2b0] sm:$0xff]  ;;  %v2866_v28 = vcombine.low %v867_v17, %v871_v18  ;;  %v800_v16 = vld [vmem:[%s3741_s6 + $0x38] sm:$0xff] }
  0xca   : > { %v2871_v29 = vcombine.high %v873_v23, %v877_v24  ;;  %v2875_v30 = vcombine.high %v875_v25, %v879_v26  ;;  %v881_v33 = vld [vmem:[%s3741_s6 + $0x2c0] sm:$0xff]  ;;  %v883_v36 = vld [vmem:[%s3741_s6 + $0x2d0] sm:$0xff]  ;;  %v2870_v39 = vcombine.low %v873_v23, %v877_v24  ;;  %v3839_v23 = vld [vmem:[%s3739_s4 + $0x28] sm:$0xff] }
  0xcb   : > { %v885_v34 = vld [vmem:[%s3741_s6 + $0x2e0] sm:$0xff]  ;;  %v887_v38 = vld [vmem:[%s3741_s6 + $0x2f0] sm:$0xff]  ;;  %v3842_v24 = vld [vmem:[%s3739_s4 + $0x18] sm:$0xff] }
  0xcc   : > { %v2879_v43 = vcombine.high %v881_v33, %v885_v34  ;;  %v891_v47 = vld [vmem:[%s3741_s6 + $0x310] sm:$0xff]  ;;  %v2878_v49 = vcombine.low %v881_v33, %v885_v34  ;;  %v2882_v50 = vcombine.low %v883_v36, %v887_v38  ;;  %v741_v33 = vld [vmem:[%s3739_s4 + $0x60] sm:$0xff] }
  0xcd   : > { %v895_v48 = vld [vmem:[%s3741_s6 + $0x330] sm:$0xff]  ;;  %v745_v32 = vld [vmem:[%s3739_s4 + $0x80] sm:$0xff] }
  0xce   : > { %v899_v55 = vld [vmem:[%s3741_s6 + $0x350] sm:$0xff]  ;;  %v2890_v58 = vcombine.low %v891_v47, %v895_v48 }
  0xcf   : > { %1888 = vmatpush1.bf16.xpose.msra.mxu1 %v2814_v41  ;;  %2114 = vmatpush1.bf16.xpose.msra.mxu0 %v2818_v44  ;;  %v2874_v41 = vcombine.low %v875_v25, %v879_v26  ;;  %v2883_v44 = vcombine.high %v883_v36, %v887_v38  ;;  %v903_v56 = vld [vmem:[%s3741_s6 + $0x370] sm:$0xff]  ;;  %v806_v25 = vld [vmem:[%s3741_s6 + $0x68] sm:$0xff]  ;;  %v804_v26 = vld [vmem:[%s3741_s6 + $0x58] sm:$0xff] }
  0xd0   : > { %1889 = vmatprep.subr.bf16.mxu1 %v2823_v45  ;;  %2115 = vmatprep.subr.bf16.mxu0 %v2827_v46  ;;  %v889_v45 = vld [vmem:[%s3741_s6 + $0x300] sm:$0xff]  ;;  %v907_v63 = vld [vmem:[%s3741_s6 + $0x390] sm:$0xff]  ;;  %v2898_v2 = vcombine.low %v899_v55, %v903_v56 }
  0xd1   : > { %v893_v46 = vld [vmem:[%s3741_s6 + $0x320] sm:$0xff]  ;;  %v911_v0 = vld [vmem:[%s3741_s6 + $0x3b0] sm:$0xff] }
  0xd2   : > { %v2886_v57 = vcombine.low %v889_v45, %v893_v46  ;;  %v915_v7 = vld [vmem:[%s3741_s6 + $0x3d0] sm:$0xff]  ;;  %v2906_v10 = vcombine.low %v907_v63, %v911_v0 }
  0xd3   : > { %v919_v8 = vld [vmem:[%s3741_s6 + $0x3f0] sm:$0xff] }
  0xd4   : > { %v2914_v18 = vcombine.low %v915_v7, %v919_v8  ;;  %v739_v38 = vld [vmem:[%s3739_s4 + $0x50] sm:$0xff] }
  0xd5   : > { %v747_v37 = vld [vmem:[%s3739_s4 + $0x90] sm:$0xff] }
  0xd6   : > { %v751_v40 = vld [vmem:[%s3739_s4 + $0xb0] sm:$0xff] }
  0xd7   : > { %1890 = vmatpush1.bf16.xpose.msra.mxu1 %v2822_v51  ;;  %2116 = vmatpush1.bf16.xpose.msra.mxu0 %v2826_v52  ;;  %v2887_v51 = vcombine.high %v889_v45, %v893_v46  ;;  %v2891_v52 = vcombine.high %v891_v47, %v895_v48  ;;  %v810_v47 = vld [vmem:[%s3741_s6 + $0x88] sm:$0xff] }
  0xd8   : > { %1891 = vmatprep.subr.bf16.mxu1 %v2831_v53  ;;  %2117 = vmatprep.subr.bf16.mxu0 %v2835_v54  ;;  %v897_v53 = vld [vmem:[%s3741_s6 + $0x340] sm:$0xff]  ;;  %v814_v48 = vld [vmem:[%s3741_s6 + $0xa8] sm:$0xff] }
  0xd9   : > { %v901_v54 = vld [vmem:[%s3741_s6 + $0x360] sm:$0xff] }
  0xda   : > { %v2894_v1 = vcombine.low %v897_v53, %v901_v54 }
  0xdf   : > { %1892 = vmatpush1.bf16.xpose.msra.mxu1 %v2830_v59  ;;  %2118 = vmatpush1.bf16.xpose.msra.mxu0 %v2834_v60  ;;  %v2895_v59 = vcombine.high %v897_v53, %v901_v54  ;;  %v2899_v60 = vcombine.high %v899_v55, %v903_v56  ;;  %v2809_v53 = vcombine.high %v810_v47, %v814_v48 }
  0xe0   : > { %1893 = vmatprep.subr.bf16.mxu1 %v2839_v61  ;;  %2119 = vmatprep.subr.bf16.mxu0 %v2843_v62  ;;  %v905_v61 = vld [vmem:[%s3741_s6 + $0x380] sm:$0xff]  ;;  %v2747_v56 = vcombine.high %v747_v37, %v751_v40 }
  0xe1   : > { %v909_v62 = vld [vmem:[%s3741_s6 + $0x3a0] sm:$0xff] }
  0xe2   : > { %v2902_v9 = vcombine.low %v905_v61, %v909_v62 }
  0xe7   : > { %1894 = vmatpush1.bf16.xpose.msra.mxu1 %v2838_v3  ;;  %2120 = vmatpush1.bf16.xpose.msra.mxu0 %v2842_v4  ;;  %v2903_v3 = vcombine.high %v905_v61, %v909_v62  ;;  %v2907_v4 = vcombine.high %v907_v63, %v911_v0  ;;  %v753_v62 = vld [vmem:[%s3739_s4 + $0xc0] sm:$0xff]  ;;  %v2808_v0 = vcombine.low %v810_v47, %v814_v48  ;;  %v775_v47 = vld [vmem:[%s3739_s4 + $0x170] sm:$0xff] }
  0xe8   : > { %1895 = vmatprep.subr.bf16.mxu1 %v2847_v5  ;;  %2121 = vmatprep.subr.bf16.mxu0 %v2851_v6  ;;  %v913_v5 = vld [vmem:[%s3741_s6 + $0x3c0] sm:$0xff] }
  0xe9   : > { %v917_v6 = vld [vmem:[%s3741_s6 + $0x3e0] sm:$0xff] }
  0xea   : > { %v2910_v17 = vcombine.low %v913_v5, %v917_v6  ;;  %v757_v63 = vld [vmem:[%s3739_s4 + $0xe0] sm:$0xff] }
  0xef   : > { %1896 = vmatpush1.bf16.xpose.msra.mxu1 %v2846_v11  ;;  %2122 = vmatpush1.bf16.xpose.msra.mxu0 %v2850_v12  ;;  %v2911_v11 = vcombine.high %v913_v5, %v917_v6  ;;  %v2915_v12 = vcombine.high %v915_v7, %v919_v8  ;;  %v2751_v7 = vcombine.high %v753_v62, %v757_v63 }
  0xf0   : > { %1897 = vmatprep.subr.bf16.mxu1 %v2855_v13  ;;  %2123 = vmatprep.subr.bf16.mxu0 %v2859_v14  ;;  %v794_v13 = vld [vmem:[%s3741_s6 + $0x8] sm:$0xff] }
  0xf1   : > { %v798_v14 = vld [vmem:[%s3741_s6 + $0x28] sm:$0xff] }
  0xf2   : > { %v2792_v36 = vcombine.low %v794_v13, %v798_v14 }
  0xf7   : > { %1898 = vmatpush1.bf16.xpose.msra.mxu1 %v2854_v19  ;;  %2124 = vmatpush1.bf16.xpose.msra.mxu0 %v2858_v20  ;;  %v2793_v19 = vcombine.high %v794_v13, %v798_v14  ;;  %v2797_v20 = vcombine.high %v796_v15, %v800_v16  ;;  %v2750_v13 = vcombine.low %v753_v62, %v757_v63  ;;  %v761_v14 = vld [vmem:[%s3739_s4 + $0x100] sm:$0xff]  ;;  %v850_v63 = vld [vmem:[%s3741_s6 + $0x1c8] sm:$0xff] }
  0xf8   : > { %1899 = vmatprep.subr.bf16.mxu1 %v2863_v21  ;;  %2125 = vmatprep.subr.bf16.mxu0 %v2867_v22  ;;  %v802_v21 = vld [vmem:[%s3741_s6 + $0x48] sm:$0xff] }
  0xf9   : > { %v3836_v22 = vld [vmem:[%s3739_s4 + $0x8] sm:$0xff] }
  0xff   : > { %1900 = vmatpush1.bf16.xpose.msra.mxu1 %v2862_v27  ;;  %2126 = vmatpush1.bf16.xpose.msra.mxu0 %v2866_v28  ;;  %v2728_v27 = vcombine.low %v3836_v22, %v3839_v23  ;;  %v3849_v28 = vld [vmem:[%s3739_s4 + $0x38] sm:$0xff] }
 0x100   : > { %1901 = vmatprep.subr.bf16.mxu1 %v2871_v29  ;;  %2127 = vmatprep.subr.bf16.mxu0 %v2875_v30  ;;  %v808_v29 = vld [vmem:[%s3741_s6 + $0x78] sm:$0xff]  ;;  %v737_v30 = vld [vmem:[%s3739_s4 + $0x40] sm:$0xff]  ;;  %v2732_v34 = vcombine.low %v3842_v24, %v3849_v28 }
 0x101   : > { %v2735_v45 = vcombine.high %v737_v30, %v741_v33  ;;  %v2734_v31 = vcombine.low %v737_v30, %v741_v33  ;;  %v834_v30 = vld [vmem:[%s3741_s6 + $0x148] sm:$0xff] }
 0x102   : > { %v838_v33 = vld [vmem:[%s3741_s6 + $0x168] sm:$0xff] }
 0x107   : > { %1902 = vmatpush1.bf16.xpose.msra.mxu1 %v2870_v39  ;;  %2128 = vmatpush1.bf16.xpose.msra.mxu0 %v2874_v41  ;;  %v743_v39 = vld [vmem:[%s3739_s4 + $0x70] sm:$0xff]  ;;  %v2796_v41 = vcombine.low %v796_v15, %v800_v16  ;;  %v765_v15 = vld [vmem:[%s3739_s4 + $0x120] sm:$0xff] }
 0x108   : > { %1903 = vmatprep.subr.bf16.mxu1 %v2879_v43  ;;  %2129 = vmatprep.subr.bf16.mxu0 %v2883_v44  ;;  %v2801_v43 = vcombine.high %v802_v21, %v806_v25  ;;  %v2805_v44 = vcombine.high %v804_v26, %v808_v29  ;;  %v2739_v46 = vcombine.high %v739_v38, %v743_v39 }
 0x10f   : > { %1904 = vmatpush1.bf16.xpose.msra.mxu1 %v2878_v49  ;;  %2130 = vmatpush1.bf16.xpose.msra.mxu0 %v2882_v50  ;;  %v812_v49 = vld [vmem:[%s3741_s6 + $0x98] sm:$0xff] }
 0x110   : > { %1905 = vmatprep.subr.bf16.mxu1 %v2887_v51  ;;  %2131 = vmatprep.subr.bf16.mxu0 %v2891_v52  ;;  %v816_v50 = vld [vmem:[%s3741_s6 + $0xb8] sm:$0xff]  ;;  %v2800_v51 = vcombine.low %v802_v21, %v806_v25  ;;  %v2738_v52 = vcombine.low %v739_v38, %v743_v39  ;;  %v2758_v39 = vcombine.low %v761_v14, %v765_v15 }
 0x111   : > { %v2813_v54 = vcombine.high %v812_v49, %v816_v50  ;;  %v840_v38 = vld [vmem:[%s3741_s6 + $0x178] sm:$0xff] }
 0x117   : > { %1906 = vmatpush1.bf16.xpose.msra.mxu1 %v2886_v57  ;;  %2132 = vmatpush1.bf16.xpose.msra.mxu0 %v2890_v58  ;;  %v818_v57 = vld [vmem:[%s3741_s6 + $0xc8] sm:$0xff] }
 0x118   : > { %1907 = vmatprep.subr.bf16.mxu1 %v2895_v59  ;;  %2133 = vmatprep.subr.bf16.mxu0 %v2899_v60  ;;  %v822_v58 = vld [vmem:[%s3741_s6 + $0xe8] sm:$0xff]  ;;  %v820_v59 = vld [vmem:[%s3741_s6 + $0xd8] sm:$0xff] }
 0x119   : > { %v824_v60 = vld [vmem:[%s3741_s6 + $0xf8] sm:$0xff]  ;;  %v2817_v5 = vcombine.high %v818_v57, %v822_v58  ;;  %v2816_v16 = vcombine.low %v818_v57, %v822_v58  ;;  %v783_v57 = vld [vmem:[%s3739_s4 + $0x1b0] sm:$0xff] }
 0x11a   : > { %v2821_v6 = vcombine.high %v820_v59, %v824_v60 }
 0x11f   : > { %1908 = vmatpush1.bf16.xpose.msra.mxu1 %v2894_v1  ;;  %2134 = vmatpush1.bf16.xpose.msra.mxu0 %v2898_v2  ;;  %v2746_v1 = vcombine.low %v747_v37, %v751_v40  ;;  %v755_v2 = vld [vmem:[%s3739_s4 + $0xd0] sm:$0xff]  ;;  %v848_v37 = vld [vmem:[%s3741_s6 + $0x1b8] sm:$0xff] }
 0x120   : > { %1909 = vmatprep.subr.bf16.mxu1 %v2903_v3  ;;  %2135 = vmatprep.subr.bf16.mxu0 %v2907_v4  ;;  %v759_v3 = vld [vmem:[%s3739_s4 + $0xf0] sm:$0xff]  ;;  %v2812_v4 = vcombine.low %v812_v49, %v816_v50  ;;  %v2833_v49 = vcombine.high %v834_v30, %v838_v33 }
 0x121   : > { %v2755_v8 = vcombine.high %v755_v2, %v759_v3 }
 0x127   : > { %1910 = vmatpush1.bf16.xpose.msra.mxu1 %v2902_v9  ;;  %2136 = vmatpush1.bf16.xpose.msra.mxu0 %v2906_v10  ;;  %v826_v9 = vld [vmem:[%s3741_s6 + $0x108] sm:$0xff] }
 0x128   : > { %1911 = vmatprep.subr.bf16.mxu1 %v2911_v11  ;;  %2137 = vmatprep.subr.bf16.mxu0 %v2915_v12  ;;  %v830_v10 = vld [vmem:[%s3741_s6 + $0x128] sm:$0xff]  ;;  %v828_v11 = vld [vmem:[%s3741_s6 + $0x118] sm:$0xff] }
 0x129   : > { %v832_v12 = vld [vmem:[%s3741_s6 + $0x138] sm:$0xff]  ;;  %v2825_v21 = vcombine.high %v826_v9, %v830_v10 }
 0x12a   : > { %v2829_v25 = vcombine.high %v828_v11, %v832_v12  ;;  %v2828_v48 = vcombine.low %v828_v11, %v832_v12 }
 0x12f   : > { %1912 = vmatpush1.bf16.xpose.msra.mxu1 %v2910_v17  ;;  %2138 = vmatpush1.bf16.xpose.msra.mxu0 %v2914_v18  ;;  %v2754_v17 = vcombine.low %v755_v2, %v759_v3  ;;  %v763_v18 = vld [vmem:[%s3739_s4 + $0x110] sm:$0xff]  ;;  %v856_v2 = vld [vmem:[%s3741_s6 + $0x1f8] sm:$0xff] }
 0x130   : > { %1994 = vmatprep.subr.bf16.mxu1 %v2793_v19  ;;  %2220 = vmatprep.subr.bf16.mxu0 %v2797_v20  ;;  %v767_v19 = vld [vmem:[%s3739_s4 + $0x130] sm:$0xff]  ;;  %v2820_v20 = vcombine.low %v820_v59, %v824_v60 }
 0x136   : > { %1914 = vmatmul.mubr.bf16.vlgmr.msra.gmra.mrb[0].mxu1 %v2726_v35  ;;  %2140 = vmatmul.mubr.bf16.vlgmr.msra.gmra.mrb[0].mxu0 %v2730_v42  ;;  %v749_v35 = vld [vmem:[%s3739_s4 + $0xa0] sm:$0xff]  ;;  %v2804_v42 = vcombine.low %v804_v26, %v808_v29  ;;  %v2759_v26 = vcombine.high %v761_v14, %v765_v15  ;;  %v2763_v29 = vcombine.high %v763_v18, %v767_v19  ;;  %v858_v15 = vld [vmem:[%s3741_s6 + $0x208] sm:$0xff] }
 0x137   : > { %1995 = vmatpush1.bf16.xpose.msra.mxu1 %v2792_v36  ;;  %2221 = vmatpush1.bf16.xpose.msra.mxu0 %v2796_v41  ;;  %v2743_v55 = vcombine.high %v745_v32, %v749_v35  ;;  %v2742_v61 = vcombine.low %v745_v32, %v749_v35  ;;  %v836_v36 = vld [vmem:[%s3741_s6 + $0x158] sm:$0xff]  ;;  %v769_v41 = vld [vmem:[%s3739_s4 + $0x140] sm:$0xff]  ;;  %v842_v35 = vld [vmem:[%s3741_s6 + $0x188] sm:$0xff] }
 0x138   : > { %1996 = vmatprep.subr.bf16.mxu1 %v2801_v43  ;;  %2222 = vmatprep.subr.bf16.mxu0 %v2805_v44  ;;  %v773_v43 = vld [vmem:[%s3739_s4 + $0x160] sm:$0xff]  ;;  %v2824_v44 = vcombine.low %v826_v9, %v830_v10  ;;  %v2837_v50 = vcombine.high %v836_v36, %v840_v38  ;;  %v2836_v58 = vcombine.low %v836_v36, %v840_v38  ;;  %v791_v9 = vld [vmem:[%s3739_s4 + $0x1f0] sm:$0xff]  ;;  %v866_v36 = vld [vmem:[%s3741_s6 + $0x248] sm:$0xff] }
 0x139   : > { %1923 = vmatprep.mubr.bf16.mxu1 %v2735_v45  ;;  %2149 = vmatprep.mubr.bf16.mxu0 %v2739_v46  ;;  %v2762_v45 = vcombine.low %v763_v18, %v767_v19  ;;  %v771_v46 = vld [vmem:[%s3739_s4 + $0x150] sm:$0xff]  ;;  %v2766_v40 = vcombine.low %v769_v41, %v773_v43  ;;  %v864_v18 = vld [vmem:[%s3741_s6 + $0x238] sm:$0xff]  ;;  %v870_v38 = vld [vmem:[%s3741_s6 + $0x268] sm:$0xff] }
 0x13a   : > { %v2771_v32 = vcombine.high %v771_v46, %v775_v47 }
 0x13e   : > { %1924 = vmatmul.mubr.bf16.gmra.mrb[4].mxu1 %v2734_v31  ;;  %2150 = vmatmul.mubr.bf16.gmra.mrb[4].mxu0 %v2738_v52  ;;  %v2767_v31 = vcombine.high %v769_v41, %v773_v43  ;;  %v844_v52 = vld [vmem:[%s3741_s6 + $0x198] sm:$0xff] }
 0x13f   : > { %1997 = vmatpush1.bf16.xpose.msra.mxu1 %v2800_v51  ;;  %2223 = vmatpush1.bf16.xpose.msra.mxu0 %v2804_v42  ;;  %v846_v51 = vld [vmem:[%s3741_s6 + $0x1a8] sm:$0xff]  ;;  %v777_v42 = vld [vmem:[%s3739_s4 + $0x180] sm:$0xff]  ;;  %v2845_v60 = vcombine.high %v844_v52, %v848_v37  ;;  %v2844_v10 = vcombine.low %v844_v52, %v848_v37  ;;  %v872_v41 = vld [vmem:[%s3741_s6 + $0x278] sm:$0xff] }
 0x140   : > { %1998 = vmatprep.subr.bf16.mxu1 %v2809_v53  ;;  %2224 = vmatprep.subr.bf16.mxu0 %v2813_v54  ;;  %v781_v53 = vld [vmem:[%s3739_s4 + $0x1a0] sm:$0xff]  ;;  %v2832_v54 = vcombine.low %v834_v30, %v838_v33  ;;  %v2841_v59 = vcombine.high %v842_v35, %v846_v51  ;;  %v2729_v30 = vcombine.high %v3836_v22, %v3839_v23  ;;  %v882_v52 = vld [vmem:[%s3741_s6 + $0x2c8] sm:$0xff] }
 0x141   : > { %1933 = vmatprep.mubr.bf16.mxu1 %v2743_v55  ;;  %2159 = vmatprep.mubr.bf16.mxu0 %v2747_v56  ;;  %v2770_v55 = vcombine.low %v771_v46, %v775_v47  ;;  %v779_v56 = vld [vmem:[%s3739_s4 + $0x190] sm:$0xff]  ;;  %v2774_v3 = vcombine.low %v777_v42, %v781_v53  ;;  %v2733_v33 = vcombine.high %v3842_v24, %v3849_v28  ;;  %v874_v47 = vld [vmem:[%s3741_s6 + $0x288] sm:$0xff]  ;;  %v756_v24 = vld [vmem:[%s3739_s4 + $0xd8] sm:$0xff] }
 0x142   : > { %v2779_v62 = vcombine.high %v779_v56, %v783_v57  ;;  %v886_v37 = vld [vmem:[%s3741_s6 + $0x2e8] sm:$0xff] }
 0x143   : > { %v754_v22 = vld [vmem:[%s3739_s4 + $0xc8] sm:$0xff] }
 0x144   : > { %v758_v23 = vld [vmem:[%s3739_s4 + $0xe8] sm:$0xff] }
 0x146   : > { %1934 = vmatmul.mubr.bf16.gmra.mrb[8].mxu1 %v2742_v61  ;;  %2160 = vmatmul.mubr.bf16.gmra.mrb[8].mxu0 %v2746_v1  ;;  %v2775_v61 = vcombine.high %v777_v42, %v781_v53  ;;  %v852_v1 = vld [vmem:[%s3741_s6 + $0x1d8] sm:$0xff] }
 0x147   : > { %1999 = vmatpush1.bf16.xpose.msra.mxu1 %v2808_v0  ;;  %2225 = vmatpush1.bf16.xpose.msra.mxu0 %v2812_v4  ;;  %v854_v0 = vld [vmem:[%s3741_s6 + $0x1e8] sm:$0xff]  ;;  %v785_v4 = vld [vmem:[%s3739_s4 + $0x1c0] sm:$0xff]  ;;  %v2853_v12 = vcombine.high %v852_v1, %v856_v2  ;;  %v888_v42 = vld [vmem:[%s3741_s6 + $0x2f8] sm:$0xff] }
 0x148   : > { %2000 = vmatprep.subr.bf16.mxu1 %v2817_v5  ;;  %2226 = vmatprep.subr.bf16.mxu0 %v2821_v6  ;;  %v789_v5 = vld [vmem:[%s3739_s4 + $0x1e0] sm:$0xff]  ;;  %v2840_v6 = vcombine.low %v842_v35, %v846_v51  ;;  %v2849_v11 = vcombine.high %v850_v63, %v854_v0 }
 0x149   : > { %1943 = vmatprep.mubr.bf16.mxu1 %v2751_v7  ;;  %2169 = vmatprep.mubr.bf16.mxu0 %v2755_v8  ;;  %v2778_v7 = vcombine.low %v779_v56, %v783_v57  ;;  %v787_v8 = vld [vmem:[%s3739_s4 + $0x1d0] sm:$0xff]  ;;  %v2782_v19 = vcombine.low %v785_v4, %v789_v5  ;;  %v890_v57 = vld [vmem:[%s3741_s6 + $0x308] sm:$0xff] }
 0x14a   : > { %v2787_v14 = vcombine.high %v787_v8, %v791_v9 }
 0x14e   : > { %1944 = vmatmul.mubr.bf16.gmra.mrb[12].mxu1 %v2750_v13  ;;  %2170 = vmatmul.mubr.bf16.gmra.mrb[12].mxu0 %v2754_v17  ;;  %v2783_v13 = vcombine.high %v785_v4, %v789_v5  ;;  %v860_v17 = vld [vmem:[%s3741_s6 + $0x218] sm:$0xff] }
 0x14f   : > { %2001 = vmatpush1.bf16.xpose.msra.mxu1 %v2816_v16  ;;  %2227 = vmatpush1.bf16.xpose.msra.mxu0 %v2820_v20  ;;  %v862_v16 = vld [vmem:[%s3741_s6 + $0x228] sm:$0xff]  ;;  %v2848_v20 = vcombine.low %v850_v63, %v854_v0  ;;  %v904_v4 = vld [vmem:[%s3741_s6 + $0x378] sm:$0xff] }
 0x150   : > { %2002 = vmatprep.subr.bf16.mxu1 %v2825_v21  ;;  %2228 = vmatprep.subr.bf16.mxu0 %v2829_v25  ;;  %v2786_v21 = vcombine.low %v787_v8, %v791_v9  ;;  %v2852_v25 = vcombine.low %v852_v1, %v856_v2  ;;  %v2856_v43 = vcombine.low %v858_v15, %v862_v16  ;;  %v898_v1 = vld [vmem:[%s3741_s6 + $0x348] sm:$0xff] }
 0x151   : > { %1953 = vmatprep.mubr.bf16.mxu1 %v2759_v26  ;;  %2179 = vmatprep.mubr.bf16.mxu0 %v2763_v29  ;;  %v2857_v26 = vcombine.high %v858_v15, %v862_v16  ;;  %v2861_v29 = vcombine.high %v860_v17, %v864_v18  ;;  %v902_v2 = vld [vmem:[%s3741_s6 + $0x368] sm:$0xff] }
 0x152   : > { %v906_v9 = vld [vmem:[%s3741_s6 + $0x388] sm:$0xff] }
 0x156   : > { %1954 = vmatmul.mubr.bf16.gmra.mrb[16].mxu1 %v2758_v39  ;;  %2180 = vmatmul.mubr.bf16.gmra.mrb[16].mxu0 %v2762_v45  ;;  %v868_v39 = vld [vmem:[%s3741_s6 + $0x258] sm:$0xff]  ;;  %v2865_v45 = vcombine.high %v866_v36, %v870_v38 }
 0x157   : > { %2003 = vmatpush1.bf16.xpose.msra.mxu1 %v2824_v44  ;;  %2229 = vmatpush1.bf16.xpose.msra.mxu0 %v2828_v48  ;;  %v2860_v44 = vcombine.low %v860_v17, %v864_v18  ;;  %v2869_v46 = vcombine.high %v868_v39, %v872_v41  ;;  %v878_v48 = vld [vmem:[%s3741_s6 + $0x2a8] sm:$0xff] }
 0x158   : > { %2004 = vmatprep.subr.bf16.mxu1 %v2833_v49  ;;  %2230 = vmatprep.subr.bf16.mxu0 %v2837_v50  ;;  %v876_v49 = vld [vmem:[%s3741_s6 + $0x298] sm:$0xff]  ;;  %v2873_v35 = vcombine.high %v874_v47, %v878_v48  ;;  %v2872_v53 = vcombine.low %v874_v47, %v878_v48  ;;  %v914_v17 = vld [vmem:[%s3741_s6 + $0x3c8] sm:$0xff] }
 0x159   : > { %1963 = vmatprep.mubr.bf16.mxu1 %v2767_v31  ;;  %2189 = vmatprep.mubr.bf16.mxu0 %v2771_v32  ;;  %v880_v50 = vld [vmem:[%s3741_s6 + $0x2b8] sm:$0xff]  ;;  %v2864_v31 = vcombine.low %v866_v36, %v870_v38  ;;  %v2868_v32 = vcombine.low %v868_v39, %v872_v41  ;;  %v918_v18 = vld [vmem:[%s3741_s6 + $0x3e8] sm:$0xff] }
 0x15a   : > { %v2877_v51 = vcombine.high %v876_v49, %v880_v50  ;;  %v738_v36 = vld [vmem:[%s3739_s4 + $0x48] sm:$0xff]  ;;  %v740_v39 = vld [vmem:[%s3739_s4 + $0x58] sm:$0xff] }
 0x15b   : > { %v742_v38 = vld [vmem:[%s3739_s4 + $0x68] sm:$0xff]  ;;  %v744_v41 = vld [vmem:[%s3739_s4 + $0x78] sm:$0xff] }
 0x15c   : > { %v748_v47 = vld [vmem:[%s3739_s4 + $0x98] sm:$0xff] }
 0x15d   : > { %v752_v48 = vld [vmem:[%s3739_s4 + $0xb8] sm:$0xff] }
 0x15e   : > { %1964 = vmatmul.mubr.bf16.gmra.mrb[20].mxu1 %v2766_v40  ;;  %2190 = vmatmul.mubr.bf16.gmra.mrb[20].mxu0 %v2770_v55  ;;  %v884_v40 = vld [vmem:[%s3741_s6 + $0x2d8] sm:$0xff]  ;;  %v2881_v55 = vcombine.high %v882_v52, %v886_v37 }
 0x15f   : > { %2005 = vmatpush1.bf16.xpose.msra.mxu1 %v2832_v54  ;;  %2231 = vmatpush1.bf16.xpose.msra.mxu0 %v2836_v58  ;;  %v2876_v54 = vcombine.low %v876_v49, %v880_v50  ;;  %v2885_v56 = vcombine.high %v884_v40, %v888_v42  ;;  %v894_v58 = vld [vmem:[%s3741_s6 + $0x328] sm:$0xff]  ;;  %v2736_v49 = vcombine.low %v738_v36, %v742_v38 }
 0x160   : > { %2006 = vmatprep.subr.bf16.mxu1 %v2841_v59  ;;  %2232 = vmatprep.subr.bf16.mxu0 %v2845_v60  ;;  %v892_v59 = vld [vmem:[%s3741_s6 + $0x318] sm:$0xff]  ;;  %v2889_v63 = vcombine.high %v890_v57, %v894_v58  ;;  %v2888_v5 = vcombine.low %v890_v57, %v894_v58  ;;  %v2740_v50 = vcombine.low %v740_v39, %v744_v41  ;;  %v770_v57 = vld [vmem:[%s3739_s4 + $0x148] sm:$0xff] }
 0x161   : > { %1973 = vmatprep.mubr.bf16.mxu1 %v2775_v61  ;;  %2199 = vmatprep.mubr.bf16.mxu0 %v2779_v62  ;;  %v896_v60 = vld [vmem:[%s3741_s6 + $0x338] sm:$0xff]  ;;  %v2880_v61 = vcombine.low %v882_v52, %v886_v37  ;;  %v2884_v62 = vcombine.low %v884_v40, %v888_v42  ;;  %v762_v52 = vld [vmem:[%s3739_s4 + $0x108] sm:$0xff] }
 0x162   : > { %v2893_v0 = vcombine.high %v892_v59, %v896_v60  ;;  %v766_v37 = vld [vmem:[%s3739_s4 + $0x128] sm:$0xff]  ;;  %v764_v40 = vld [vmem:[%s3739_s4 + $0x118] sm:$0xff] }
 0x163   : > { %v768_v42 = vld [vmem:[%s3739_s4 + $0x138] sm:$0xff]  ;;  %v774_v58 = vld [vmem:[%s3739_s4 + $0x168] sm:$0xff] }
 0x166   : > { %1974 = vmatmul.mubr.bf16.gmra.mrb[24].mxu1 %v2774_v3  ;;  %2200 = vmatmul.mubr.bf16.gmra.mrb[24].mxu0 %v2778_v7  ;;  %v900_v3 = vld [vmem:[%s3741_s6 + $0x358] sm:$0xff]  ;;  %v2897_v7 = vcombine.high %v898_v1, %v902_v2 }
 0x167   : > { %2007 = vmatpush1.bf16.xpose.msra.mxu1 %v2840_v6  ;;  %2233 = vmatpush1.bf16.xpose.msra.mxu0 %v2844_v10  ;;  %v2892_v6 = vcombine.low %v892_v59, %v896_v60  ;;  %v2901_v8 = vcombine.high %v900_v3, %v904_v4  ;;  %v910_v10 = vld [vmem:[%s3741_s6 + $0x3a8] sm:$0xff]  ;;  %v772_v59 = vld [vmem:[%s3739_s4 + $0x158] sm:$0xff] }
 0x168   : > { %2008 = vmatprep.subr.bf16.mxu1 %v2849_v11  ;;  %2234 = vmatprep.subr.bf16.mxu0 %v2853_v12  ;;  %v908_v11 = vld [vmem:[%s3741_s6 + $0x398] sm:$0xff]  ;;  %v2905_v15 = vcombine.high %v906_v9, %v910_v10 }
 0x169   : > { %1983 = vmatprep.mubr.bf16.mxu1 %v2783_v13  ;;  %2209 = vmatprep.mubr.bf16.mxu0 %v2787_v14  ;;  %v912_v12 = vld [vmem:[%s3741_s6 + $0x3b8] sm:$0xff]  ;;  %v2896_v13 = vcombine.low %v898_v1, %v902_v2  ;;  %v2900_v14 = vcombine.low %v900_v3, %v904_v4  ;;  %v778_v1 = vld [vmem:[%s3739_s4 + $0x188] sm:$0xff] }
 0x16a   : > { %v2909_v16 = vcombine.high %v908_v11, %v912_v12  ;;  %v776_v60 = vld [vmem:[%s3739_s4 + $0x178] sm:$0xff]  ;;  %v782_v2 = vld [vmem:[%s3739_s4 + $0x1a8] sm:$0xff] }
 0x16b   : > { %v780_v3 = vld [vmem:[%s3739_s4 + $0x198] sm:$0xff] }
 0x16c   : > { %v784_v4 = vld [vmem:[%s3739_s4 + $0x1b8] sm:$0xff] }
 0x16e   : > { %1984 = vmatmul.mubr.bf16.gmra.mrb[28].mxu1 %v2782_v19  ;;  %2210 = vmatmul.mubr.bf16.gmra.mrb[28].mxu0 %v2786_v21  ;;  %v916_v19 = vld [vmem:[%s3741_s6 + $0x3d8] sm:$0xff]  ;;  %v2904_v21 = vcombine.low %v906_v9, %v910_v10  ;;  %v786_v9 = vld [vmem:[%s3739_s4 + $0x1c8] sm:$0xff] }
 0x16f   : > { %2009 = vmatpush1.bf16.xpose.msra.mxu1 %v2848_v20  ;;  %2235 = vmatpush1.bf16.xpose.msra.mxu0 %v2852_v25  ;;  %v920_v20 = vld [vmem:[%s3741_s6 + $0x3f8] sm:$0xff]  ;;  %v2908_v25 = vcombine.low %v908_v11, %v912_v12  ;;  %v790_v10 = vld [vmem:[%s3739_s4 + $0x1e8] sm:$0xff] }
 0x170   : > { %2010 = vmatprep.subr.bf16.mxu1 %v2857_v26  ;;  %2236 = vmatprep.subr.bf16.mxu0 %v2861_v29  ;;  %v2913_v26 = vcombine.high %v914_v17, %v918_v18  ;;  %v2917_v29 = vcombine.high %v916_v19, %v920_v20  ;;  %v788_v11 = vld [vmem:[%s3739_s4 + $0x1d8] sm:$0xff] }
 0x171   : > { %2026 = vmatprep.mubr.bf16.mxu1 %v2729_v30  ;;  %2252 = vmatprep.mubr.bf16.mxu0 %v2733_v33  ;;  %v2912_v30 = vcombine.low %v914_v17, %v918_v18  ;;  %v2916_v33 = vcombine.low %v916_v19, %v920_v20  ;;  %v792_v12 = vld [vmem:[%s3739_s4 + $0x1f8] sm:$0xff]  ;;  %v2784_v17 = vcombine.low %v786_v9, %v790_v10  ;;  %v697_v20 = vld [vmem:[#allocation2] sm:$0xff] }
 0x172   : > { %v2788_v18 = vcombine.low %v788_v11, %v792_v12 }
 0x177   : > { %2011 = vmatpush1.bf16.xpose.msra.mxu1 %v2856_v43  ;;  %2237 = vmatpush1.bf16.xpose.msra.mxu0 %v2860_v44  ;;  %v2737_v43 = vcombine.high %v738_v36, %v742_v38  ;;  %v2741_v44 = vcombine.high %v740_v39, %v744_v41  ;;  %v699_v38 = vld [vmem:[#allocation2 + $0x10] sm:$0xff] }
 0x178   : > { %2012 = vmatprep.subr.bf16.mxu1 %v2865_v45  ;;  %2238 = vmatprep.subr.bf16.mxu0 %v2869_v46  ;;  %v746_v45 = vld [vmem:[%s3739_s4 + $0x88] sm:$0xff] }
 0x179   : > { %v750_v46 = vld [vmem:[%s3739_s4 + $0xa8] sm:$0xff] }
 0x17a   : > { %v2744_v28 = vcombine.low %v746_v45, %v750_v46 }
 0x17f   : > { %2013 = vmatpush1.bf16.xpose.msra.mxu1 %v2864_v31  ;;  %2239 = vmatpush1.bf16.xpose.msra.mxu0 %v2868_v32  ;;  %v2745_v31 = vcombine.high %v746_v45, %v750_v46  ;;  %v2749_v32 = vcombine.high %v748_v47, %v752_v48  ;;  %v700_v45 = vld [vmem:[#allocation2 + $0x18] sm:$0xff] }
 0x180   : > { %2014 = vmatprep.subr.bf16.mxu1 %v2873_v35  ;;  %2240 = vmatprep.subr.bf16.mxu0 %v2877_v51  ;;  %v2753_v35 = vcombine.high %v754_v22, %v758_v23 }
 0x187   : > { %2015 = vmatpush1.bf16.xpose.msra.mxu1 %v2872_v53  ;;  %2241 = vmatpush1.bf16.xpose.msra.mxu0 %v2876_v54  ;;  %v2752_v53 = vcombine.low %v754_v22, %v758_v23 }
 0x188   : > { %2016 = vmatprep.subr.bf16.mxu1 %v2881_v55  ;;  %2242 = vmatprep.subr.bf16.mxu0 %v2885_v56  ;;  %v2761_v55 = vcombine.high %v762_v52, %v766_v37  ;;  %v2765_v56 = vcombine.high %v764_v40, %v768_v42 }
 0x18f   : > { %2017 = vmatpush1.bf16.xpose.msra.mxu1 %v2880_v61  ;;  %2243 = vmatpush1.bf16.xpose.msra.mxu0 %v2884_v62  ;;  %v2760_v61 = vcombine.low %v762_v52, %v766_v37  ;;  %v2764_v62 = vcombine.low %v764_v40, %v768_v42 }
 0x190   : > { %2018 = vmatprep.subr.bf16.mxu1 %v2889_v63  ;;  %2244 = vmatprep.subr.bf16.mxu0 %v2893_v0  ;;  %v2769_v63 = vcombine.high %v770_v57, %v774_v58  ;;  %v2773_v0 = vcombine.high %v772_v59, %v776_v60 }
 0x197   : > { %2019 = vmatpush1.bf16.xpose.msra.mxu1 %v2888_v5  ;;  %2245 = vmatpush1.bf16.xpose.msra.mxu0 %v2892_v6  ;;  %v2768_v5 = vcombine.low %v770_v57, %v774_v58  ;;  %v2772_v6 = vcombine.low %v772_v59, %v776_v60  ;;  %v705_v60 = vld [vmem:[#allocation2 + $0x40] sm:$0xff] }
 0x198   : > { %2020 = vmatprep.subr.bf16.mxu1 %v2897_v7  ;;  %2246 = vmatprep.subr.bf16.mxu0 %v2901_v8  ;;  %v2777_v7 = vcombine.high %v778_v1, %v782_v2  ;;  %v2781_v8 = vcombine.high %v780_v3, %v784_v4 }
 0x19f   : > { %2021 = vmatpush1.bf16.xpose.msra.mxu1 %v2896_v13  ;;  %2247 = vmatpush1.bf16.xpose.msra.mxu0 %v2900_v14  ;;  %v2776_v13 = vcombine.low %v778_v1, %v782_v2  ;;  %v2780_v14 = vcombine.low %v780_v3, %v784_v4  ;;  %v707_v4 = vld [vmem:[#allocation2 + $0x50] sm:$0xff] }
 0x1a0   : > { %2022 = vmatprep.subr.bf16.mxu1 %v2905_v15  ;;  %2248 = vmatprep.subr.bf16.mxu0 %v2909_v16  ;;  %v2785_v15 = vcombine.high %v786_v9, %v790_v10  ;;  %v2789_v16 = vcombine.high %v788_v11, %v792_v12  ;;  %v708_v9 = vld [vmem:[#allocation2 + $0x58] sm:$0xff] }
 0x1a7   : > { %2023 = vmatpush1.bf16.xpose.msra.mxu1 %v2904_v21  ;;  %2249 = vmatpush1.bf16.xpose.msra.mxu0 %v2908_v25 }
 0x1a8   : > { %2024 = vmatprep.subr.bf16.mxu1 %v2913_v26  ;;  %2250 = vmatprep.subr.bf16.mxu0 %v2917_v29  ;;  %v698_v29 = vld [vmem:[#allocation2 + $0x8] sm:$0xff] }
 0x1af   : > { %2025 = vmatpush1.bf16.xpose.msra.mxu1 %v2912_v30  ;;  %2251 = vmatpush1.bf16.xpose.msra.mxu0 %v2916_v33 }
 0x1b6   : > { %2027 = vmatmul.mubr.bf16.vlgmr.msra.gmra.mrb[0].mxu1 %v2728_v27  ;;  %2253 = vmatmul.mubr.bf16.vlgmr.msra.gmra.mrb[0].mxu0 %v2732_v34  ;;  %v760_v27 = vld [vmem:[%s3739_s4 + $0xf8] sm:$0xff]  ;;  %v2748_v34 = vcombine.low %v748_v47, %v752_v48 }
 0x1b7   : > { %2036 = vmatprep.mubr.bf16.mxu1 %v2737_v43  ;;  %2262 = vmatprep.mubr.bf16.mxu0 %v2741_v44  ;;  %v2757_v51 = vcombine.high %v756_v24, %v760_v27  ;;  %v2756_v54 = vcombine.low %v756_v24, %v760_v27  ;;  %v702_v27 = vld [vmem:[#allocation2 + $0x28] sm:$0xff] }
 0x1be   : > { %2037 = vmatmul.mubr.bf16.gmra.mrb[4].mxu1 %v2736_v49  ;;  %2263 = vmatmul.mubr.bf16.gmra.mrb[4].mxu0 %v2740_v50 }
 0x1bf   : > { %2046 = vmatprep.mubr.bf16.mxu1 %v2745_v31  ;;  %2272 = vmatprep.mubr.bf16.mxu0 %v2749_v32  ;;  %v701_v32 = vld [vmem:[#allocation2 + $0x20] sm:$0xff] }
 0x1c6   : > { %2047 = vmatmul.mubr.bf16.gmra.mrb[8].mxu1 %v2744_v28  ;;  %2273 = vmatmul.mubr.bf16.gmra.mrb[8].mxu0 %v2748_v34 }
 0x1c7   : > { %2056 = vmatprep.mubr.bf16.mxu1 %v2753_v35  ;;  %2282 = vmatprep.mubr.bf16.mxu0 %v2757_v51  ;;  %v703_v51 = vld [vmem:[#allocation2 + $0x30] sm:$0xff] }
 0x1ce   : > { %2057 = vmatmul.mubr.bf16.gmra.mrb[12].mxu1 %v2752_v53  ;;  %2283 = vmatmul.mubr.bf16.gmra.mrb[12].mxu0 %v2756_v54  ;;  %v704_v53 = vld [vmem:[#allocation2 + $0x38] sm:$0xff] }
 0x1cf   : > { %2066 = vmatprep.mubr.bf16.mxu1 %v2761_v55  ;;  %2292 = vmatprep.mubr.bf16.mxu0 %v2765_v56 }
 0x1d6   : > { %2067 = vmatmul.mubr.bf16.gmra.mrb[16].mxu1 %v2760_v61  ;;  %2293 = vmatmul.mubr.bf16.gmra.mrb[16].mxu0 %v2764_v62 }
 0x1d7   : > { %2076 = vmatprep.mubr.bf16.mxu1 %v2769_v63  ;;  %2302 = vmatprep.mubr.bf16.mxu0 %v2773_v0  ;;  %v706_v0 = vld [vmem:[#allocation2 + $0x48] sm:$0xff] }
 0x1de   : > { %2077 = vmatmul.mubr.bf16.gmra.mrb[20].mxu1 %v2768_v5  ;;  %2303 = vmatmul.mubr.bf16.gmra.mrb[20].mxu0 %v2772_v6 }
 0x1df   : > { %2086 = vmatprep.mubr.bf16.mxu1 %v2777_v7  ;;  %2312 = vmatprep.mubr.bf16.mxu0 %v2781_v8 }
 0x1e6   : > { %2087 = vmatmul.mubr.bf16.gmra.mrb[24].mxu1 %v2776_v13  ;;  %2313 = vmatmul.mubr.bf16.gmra.mrb[24].mxu0 %v2780_v14 }
 0x1e7   : > { %2096 = vmatprep.mubr.bf16.mxu1 %v2785_v15  ;;  %2322 = vmatprep.mubr.bf16.mxu0 %v2789_v16  ;;  %v709_v16 = vld [vmem:[#allocation2 + $0x60] sm:$0xff] }
 0x1ee   : > { %2097 = vmatmul.mubr.bf16.gmra.mrb[28].mxu1 %v2784_v17  ;;  %2323 = vmatmul.mubr.bf16.gmra.mrb[28].mxu0 %v2788_v18 }
 0x289   : > { %v2028_v19 = vpop.f32.mrb[0].mxu1  ;;  %v2254_v21 = vpop.f32.mrb[0].mxu0 }
 0x28a   : > { %v2030_v25 = vpop.f32.mrb[1].mxu1  ;;  %v2927_v26 = vadd.f32 %v2254_v21, %v2028_v19  ;;  %v2256_v30 = vpop.f32.mrb[1].mxu0 }
 0x28b   : > { %v2032_v33 = vpop.f32.mrb[2].mxu1  ;;  %v2928_v36 = vadd.f32 %v2256_v30, %v2030_v25  ;;  %v2258_v39 = vpop.f32.mrb[2].mxu0 }
 0x28c   : > { %v2034_v41 = vpop.f32.mrb[3].mxu1  ;;  %v2333_v43 = vadd.f32 %v2927_v26, %v697_v20  ;;  %v2929_v44 = vadd.f32 %v2258_v39, %v2032_v33  ;;  %v2260_v46 = vpop.f32.mrb[3].mxu0  ;;  %v710_v20 = vld [vmem:[#allocation2 + $0x68] sm:$0xff]  ;;  %v712_v39 = vld [vmem:[#allocation2 + $0x78] sm:$0xff] }
 0x28d   : > { %v2334_v47 = vadd.f32 %v2928_v36, %v698_v29  ;;  %v2930_v48 = vadd.f32 %v2260_v46, %v2034_v41  ;;  %v711_v29 = vld [vmem:[#allocation2 + $0x70] sm:$0xff] }
 0x28e   : > { %2365 = vst [vmem:[#allocation2] sm:$0xff] %v2333_v43  ;;  %v2335_v49 = vadd.f32 %v2929_v44, %v699_v38 }
 0x28f   : > { %2366 = vst [vmem:[#allocation2 + $0x8] sm:$0xff] %v2334_v47  ;;  %v2336_v50 = vadd.f32 %v2930_v48, %v700_v45  ;;  %v713_v48 = vld [vmem:[#allocation2 + $0x80] sm:$0xff] }
 0x290   : > { %2367 = vst [vmem:[#allocation2 + $0x10] sm:$0xff] %v2335_v49 }
 0x291   : > { %v2038_v31 = vpop.f32.mrb[4].mxu1  ;;  %2368 = vst [vmem:[#allocation2 + $0x18] sm:$0xff] %v2336_v50  ;;  %v2264_v22 = vpop.f32.mrb[4].mxu0 }
 0x292   : > { %v2040_v23 = vpop.f32.mrb[5].mxu1  ;;  %v2931_v24 = vadd.f32 %v2264_v22, %v2038_v31  ;;  %v2266_v28 = vpop.f32.mrb[5].mxu0 }
 0x293   : > { %v2042_v34 = vpop.f32.mrb[6].mxu1  ;;  %v2932_v35 = vadd.f32 %v2266_v28, %v2040_v23  ;;  %v2268_v52 = vpop.f32.mrb[6].mxu0 }
 0x294   : > { %v2044_v37 = vpop.f32.mrb[7].mxu1  ;;  %v2337_v40 = vadd.f32 %v2931_v24, %v701_v32  ;;  %v2933_v42 = vadd.f32 %v2268_v52, %v2042_v34  ;;  %v2270_v54 = vpop.f32.mrb[7].mxu0  ;;  %v714_v32 = vld [vmem:[#allocation2 + $0x88] sm:$0xff]  ;;  %v716_v52 = vld [vmem:[#allocation2 + $0x98] sm:$0xff] }
 0x295   : > { %v2338_v55 = vadd.f32 %v2932_v35, %v702_v27  ;;  %v2934_v56 = vadd.f32 %v2270_v54, %v2044_v37  ;;  %v715_v27 = vld [vmem:[#allocation2 + $0x90] sm:$0xff] }
 0x296   : > { %2369 = vst [vmem:[#allocation2 + $0x20] sm:$0xff] %v2337_v40  ;;  %v2339_v57 = vadd.f32 %v2933_v42, %v703_v51 }
 0x297   : > { %2370 = vst [vmem:[#allocation2 + $0x28] sm:$0xff] %v2338_v55  ;;  %v2340_v58 = vadd.f32 %v2934_v56, %v704_v53  ;;  %v717_v56 = vld [vmem:[#allocation2 + $0xa0] sm:$0xff] }
 0x298   : > { %2371 = vst [vmem:[#allocation2 + $0x30] sm:$0xff] %v2339_v57 }
 0x299   : > { %v2048_v59 = vpop.f32.mrb[8].mxu1  ;;  %2372 = vst [vmem:[#allocation2 + $0x38] sm:$0xff] %v2340_v58  ;;  %v2274_v61 = vpop.f32.mrb[8].mxu0 }
 0x29a   : > { %v2050_v62 = vpop.f32.mrb[9].mxu1  ;;  %v2935_v63 = vadd.f32 %v2274_v61, %v2048_v59  ;;  %v2276_v1 = vpop.f32.mrb[9].mxu0 }
 0x29b   : > { %v2052_v2 = vpop.f32.mrb[10].mxu1  ;;  %v2936_v3 = vadd.f32 %v2276_v1, %v2050_v62  ;;  %v2278_v5 = vpop.f32.mrb[10].mxu0 }
 0x29c   : > { %v2054_v6 = vpop.f32.mrb[11].mxu1  ;;  %v2341_v7 = vadd.f32 %v2935_v63, %v705_v60  ;;  %v2937_v8 = vadd.f32 %v2278_v5, %v2052_v2  ;;  %v2280_v10 = vpop.f32.mrb[11].mxu0  ;;  %v718_v60 = vld [vmem:[#allocation2 + $0xa8] sm:$0xff]  ;;  %v720_v5 = vld [vmem:[#allocation2 + $0xb8] sm:$0xff] }
 0x29d   : > { %v2342_v11 = vadd.f32 %v2936_v3, %v706_v0  ;;  %v2938_v12 = vadd.f32 %v2280_v10, %v2054_v6  ;;  %v719_v0 = vld [vmem:[#allocation2 + $0xb0] sm:$0xff] }
 0x29e   : > { %2373 = vst [vmem:[#allocation2 + $0x40] sm:$0xff] %v2341_v7  ;;  %v2343_v13 = vadd.f32 %v2937_v8, %v707_v4 }
 0x29f   : > { %2374 = vst [vmem:[#allocation2 + $0x48] sm:$0xff] %v2342_v11  ;;  %v2344_v14 = vadd.f32 %v2938_v12, %v708_v9  ;;  %v721_v12 = vld [vmem:[#allocation2 + $0xc0] sm:$0xff] }
 0x2a0   : > { %2375 = vst [vmem:[#allocation2 + $0x50] sm:$0xff] %v2343_v13 }
 0x2a1   : > { %v2058_v15 = vpop.f32.mrb[12].mxu1  ;;  %2376 = vst [vmem:[#allocation2 + $0x58] sm:$0xff] %v2344_v14  ;;  %v2284_v17 = vpop.f32.mrb[12].mxu0 }
 0x2a2   : > { %v2060_v18 = vpop.f32.mrb[13].mxu1  ;;  %v2939_v19 = vadd.f32 %v2284_v17, %v2058_v15  ;;  %v2286_v21 = vpop.f32.mrb[13].mxu0 }
 0x2a3   : > { %v2062_v25 = vpop.f32.mrb[14].mxu1  ;;  %v2940_v26 = vadd.f32 %v2286_v21, %v2060_v18  ;;  %v2288_v30 = vpop.f32.mrb[14].mxu0 }
 0x2a4   : > { %v2064_v33 = vpop.f32.mrb[15].mxu1  ;;  %v2345_v36 = vadd.f32 %v2939_v19, %v709_v16  ;;  %v2941_v38 = vadd.f32 %v2288_v30, %v2062_v25  ;;  %v2290_v41 = vpop.f32.mrb[15].mxu0  ;;  %v722_v16 = vld [vmem:[#allocation2 + $0xc8] sm:$0xff]  ;;  %v724_v30 = vld [vmem:[#allocation2 + $0xd8] sm:$0xff] }
 0x2a5   : > { %v2346_v43 = vadd.f32 %v2940_v26, %v710_v20  ;;  %v2942_v44 = vadd.f32 %v2290_v41, %v2064_v33  ;;  %v723_v20 = vld [vmem:[#allocation2 + $0xd0] sm:$0xff] }
 0x2a6   : > { %2377 = vst [vmem:[#allocation2 + $0x60] sm:$0xff] %v2345_v36  ;;  %v2347_v45 = vadd.f32 %v2941_v38, %v711_v29 }
 0x2a7   : > { %2378 = vst [vmem:[#allocation2 + $0x68] sm:$0xff] %v2346_v43  ;;  %v2348_v46 = vadd.f32 %v2942_v44, %v712_v39  ;;  %v725_v44 = vld [vmem:[#allocation2 + $0xe0] sm:$0xff] }
 0x2a8   : > { %2379 = vst [vmem:[#allocation2 + $0x70] sm:$0xff] %v2347_v45 }
 0x2a9   : > { %v2068_v47 = vpop.f32.mrb[16].mxu1  ;;  %2380 = vst [vmem:[#allocation2 + $0x78] sm:$0xff] %v2348_v46  ;;  %v2294_v49 = vpop.f32.mrb[16].mxu0 }
 0x2aa   : > { %v2070_v50 = vpop.f32.mrb[17].mxu1  ;;  %v2943_v31 = vadd.f32 %v2294_v49, %v2068_v47  ;;  %v2296_v22 = vpop.f32.mrb[17].mxu0 }
 0x2ab   : > { %v2072_v23 = vpop.f32.mrb[18].mxu1  ;;  %v2944_v24 = vadd.f32 %v2296_v22, %v2070_v50  ;;  %v2298_v28 = vpop.f32.mrb[18].mxu0 }
 0x2ac   : > { %v2074_v34 = vpop.f32.mrb[19].mxu1  ;;  %v2349_v35 = vadd.f32 %v2943_v31, %v713_v48  ;;  %v2945_v51 = vadd.f32 %v2298_v28, %v2072_v23  ;;  %v2300_v37 = vpop.f32.mrb[19].mxu0  ;;  %v726_v48 = vld [vmem:[#allocation2 + $0xe8] sm:$0xff]  ;;  %v728_v28 = vld [vmem:[#allocation2 + $0xf8] sm:$0xff] }
 0x2ad   : > { %v2350_v40 = vadd.f32 %v2944_v24, %v714_v32  ;;  %v2946_v42 = vadd.f32 %v2300_v37, %v2074_v34  ;;  %v727_v32 = vld [vmem:[#allocation2 + $0xf0] sm:$0xff] }
 0x2ae   : > { %2381 = vst [vmem:[#allocation2 + $0x80] sm:$0xff] %v2349_v35  ;;  %v2351_v53 = vadd.f32 %v2945_v51, %v715_v27 }
 0x2af   : > { %2382 = vst [vmem:[#allocation2 + $0x88] sm:$0xff] %v2350_v40  ;;  %v2352_v54 = vadd.f32 %v2946_v42, %v716_v52  ;;  %v2435_v40 = vlaneseq (!%p2918_p5)  ;;  %v2433_v42 = vld [vmem:[%s657_s29] sm:$0x3] (!%p2918_p5) }
 0x2b0   : > { %2383 = vst [vmem:[#allocation2 + $0x90] sm:$0xff] %v2351_v53 }
 0x2b1   : > { %v2078_v55 = vpop.f32.mrb[20].mxu1  ;;  %2384 = vst [vmem:[#allocation2 + $0x98] sm:$0xff] %v2352_v54  ;;  %v2304_v57 = vpop.f32.mrb[20].mxu0  ;;  %v2436_v53 = vshrl.u32 (!%p2918_p5), %v2435_v40, 7  ;;  %v2401_v54 = vld [vmem:[#allocation2] sm:$0xff] (!%p2918_p5) }
 0x2b2   : > { %v2080_v58 = vpop.f32.mrb[21].mxu1  ;;  %v2947_v59 = vadd.f32 %v2304_v57, %v2078_v55  ;;  %v2306_v61 = vpop.f32.mrb[21].mxu0  ;;  %v2402_v55 = vld [vmem:[#allocation2 + $0x8] sm:$0xff] (!%p2918_p5)  ;;  %v2404_v57 = vld [vmem:[#allocation2 + $0x18] sm:$0xff] (!%p2918_p5) }
 0x2b3   : > { %v2082_v62 = vpop.f32.mrb[22].mxu1  ;;  %v2948_v63 = vadd.f32 %v2306_v61, %v2080_v58  ;;  %v2308_v1 = vpop.f32.mrb[22].mxu0  ;;  %v2437_v58 = vsub.s32 (!%p2918_p5), 0, %v2436_v53  ;;  %v2406_v61 = vld [vmem:[#allocation2 + $0x28] sm:$0xff] (!%p2918_p5) }
 0x2b4   : > { %v2084_v2 = vpop.f32.mrb[23].mxu1  ;;  %v2353_v3 = vadd.f32 %v2947_v59, %v717_v56  ;;  %v2949_v4 = vadd.f32 %v2308_v1, %v2082_v62  ;;  %v2310_v6 = vpop.f32.mrb[23].mxu0  ;;  %v2403_v56 = vld [vmem:[#allocation2 + $0x10] sm:$0xff] (!%p2918_p5)  ;;  %v2441_v59 = vsub.s32 (!%p2918_p5), 1, %v2436_v53  ;;  %v2410_v1 = vld [vmem:[#allocation2 + $0x48] sm:$0xff] (!%p2918_p5) }
 0x2b5   : > { %v2354_v7 = vadd.f32 %v2948_v63, %v718_v60  ;;  %v2950_v8 = vadd.f32 %v2310_v6, %v2084_v2  ;;  %v2405_v60 = vld [vmem:[#allocation2 + $0x20] sm:$0xff] (!%p2918_p5)  ;;  %v2407_v62 = vld [vmem:[#allocation2 + $0x30] sm:$0xff] (!%p2918_p5)  ;;  %v2408_v63 = vld [vmem:[#allocation2 + $0x38] sm:$0xff] (!%p2918_p5) }
 0x2b6   : > { %2385 = vst [vmem:[#allocation2 + $0xa0] sm:$0xff] %v2353_v3  ;;  %v2355_v9 = vadd.f32 %v2949_v4, %v719_v0  ;;  %v2409_v0 = vld [vmem:[#allocation2 + $0x40] sm:$0xff] (!%p2918_p5)  ;;  %v2411_v2 = vld [vmem:[#allocation2 + $0x50] sm:$0xff] (!%p2918_p5)  ;;  %v3988_v3 = vrot.slane (!%p2918_p5), %v2433_v42, %v2437_v58  ;;  %v3990_v4 = vrot.slane (!%p2918_p5), %v2433_v42, %v2441_v59 }
 0x2b7   : > { %2386 = vst [vmem:[#allocation2 + $0xa8] sm:$0xff] %v2354_v7  ;;  %v2356_v10 = vadd.f32 %v2950_v8, %v720_v5  ;;  %v2412_v5 = vld [vmem:[#allocation2 + $0x58] sm:$0xff] (!%p2918_p5)  ;;  %v2413_v6 = vld [vmem:[#allocation2 + $0x60] sm:$0xff] (!%p2918_p5)  ;;  %v2414_v7 = vld [vmem:[#allocation2 + $0x68] sm:$0xff] (!%p2918_p5) }
 0x2b8   : > { %2387 = vst [vmem:[#allocation2 + $0xb0] sm:$0xff] %v2355_v9  ;;  %v2415_v8 = vld [vmem:[#allocation2 + $0x70] sm:$0xff] (!%p2918_p5)  ;;  %v2416_v9 = vld [vmem:[#allocation2 + $0x78] sm:$0xff] (!%p2918_p5) }
 0x2b9   : > { %v2088_v11 = vpop.f32.mrb[24].mxu1  ;;  %2388 = vst [vmem:[#allocation2 + $0xb8] sm:$0xff] %v2356_v10  ;;  %v2314_v13 = vpop.f32.mrb[24].mxu0  ;;  %v2417_v10 = vld [vmem:[#allocation2 + $0x80] sm:$0xff] (!%p2918_p5) }
 0x2ba   : > { %v2090_v14 = vpop.f32.mrb[25].mxu1  ;;  %v2951_v15 = vadd.f32 %v2314_v13, %v2088_v11  ;;  %v2316_v17 = vpop.f32.mrb[25].mxu0  ;;  %v2445_v11 = vadd.f32 (!%p2918_p5), %v3988_v3, %v2401_v54  ;;  %v2447_v13 = vadd.f32 (!%p2918_p5), %v3988_v3, %v2403_v56 }
 0x2bb   : > { %v2092_v18 = vpop.f32.mrb[26].mxu1  ;;  %v2952_v19 = vadd.f32 %v2316_v17, %v2090_v14  ;;  %v2318_v21 = vpop.f32.mrb[26].mxu0  ;;  %v2448_v14 = vadd.f32 (!%p2918_p5), %v3990_v4, %v2404_v57  ;;  %v2420_v17 = vld [vmem:[#allocation2 + $0x98] sm:$0xff] (!%p2918_p5) }
 0x2bc   : > { %v2094_v25 = vpop.f32.mrb[27].mxu1  ;;  %v2357_v26 = vadd.f32 %v2951_v15, %v721_v12  ;;  %v2953_v29 = vadd.f32 %v2318_v21, %v2092_v18  ;;  %v2320_v33 = vpop.f32.mrb[27].mxu0  ;;  %v2446_v12 = vadd.f32 (!%p2918_p5), %v3990_v4, %v2402_v55  ;;  %v2418_v15 = vld [vmem:[#allocation2 + $0x88] sm:$0xff] (!%p2918_p5)  ;;  %v2449_v18 = vadd.f32 (!%p2918_p5), %v3988_v3, %v2405_v60  ;;  %2477 = vst [vmem:[%s3743_s1] sm:$0xff] (!%p2918_p5), %v2445_v11 }
 0x2bd   : > { %v2358_v36 = vadd.f32 %v2952_v19, %v722_v16  ;;  %v2954_v38 = vadd.f32 %v2320_v33, %v2094_v25  ;;  %v2419_v16 = vld [vmem:[#allocation2 + $0x90] sm:$0xff] (!%p2918_p5)  ;;  %v2450_v19 = vadd.f32 (!%p2918_p5), %v3990_v4, %v2406_v61  ;;  %v2452_v21 = vadd.f32 (!%p2918_p5), %v3990_v4, %v2408_v63  ;;  %v2421_v25 = vld [vmem:[#allocation2 + $0xa0] sm:$0xff] (!%p2918_p5)  ;;  %2479 = vst [vmem:[%s3743_s1 + $0x10] sm:$0xff] (!%p2918_p5), %v2447_v13 }
 0x2be   : > { %2389 = vst [vmem:[#allocation2 + $0xc0] sm:$0xff] %v2357_v26  ;;  %v2359_v39 = vadd.f32 %v2953_v29, %v723_v20  ;;  %v2451_v20 = vadd.f32 (!%p2918_p5), %v3988_v3, %v2407_v62  ;;  %v2422_v26 = vld [vmem:[#allocation2 + $0xa8] sm:$0xff] (!%p2918_p5)  ;;  %2478 = vst [vmem:[%s3743_s1 + $0x8] sm:$0xff] (!%p2918_p5), %v2446_v12  ;;  %v2454_v33 = vadd.f32 (!%p2918_p5), %v3990_v4, %v2410_v1 }
 0x2bf   : > { %2390 = vst [vmem:[#allocation2 + $0xc8] sm:$0xff] %v2358_v36  ;;  %v2360_v41 = vadd.f32 %v2954_v38, %v724_v30  ;;  %v2423_v29 = vld [vmem:[#allocation2 + $0xb0] sm:$0xff] (!%p2918_p5)  ;;  %2480 = vst [vmem:[%s3743_s1 + $0x18] sm:$0xff] (!%p2918_p5), %v2448_v14  ;;  %v2453_v30 = vadd.f32 (!%p2918_p5), %v3988_v3, %v2409_v0  ;;  %v2455_v36 = vadd.f32 (!%p2918_p5), %v3988_v3, %v2411_v2 }
 0x2c0   : > { %2391 = vst [vmem:[#allocation2 + $0xd0] sm:$0xff] %v2359_v39  ;;  %v2456_v38 = vadd.f32 (!%p2918_p5), %v3990_v4, %v2412_v5  ;;  %v2424_v39 = vld [vmem:[#allocation2 + $0xb8] sm:$0xff] (!%p2918_p5)  ;;  %2481 = vst [vmem:[%s3743_s1 + $0x20] sm:$0xff] (!%p2918_p5), %v2449_v18 }
 0x2c1   : > { %v2098_v43 = vpop.f32.mrb[28].mxu1  ;;  %2392 = vst [vmem:[#allocation2 + $0xd8] sm:$0xff] %v2360_v41  ;;  %v2324_v45 = vpop.f32.mrb[28].mxu0  ;;  %2482 = vst [vmem:[%s3743_s1 + $0x28] sm:$0xff] (!%p2918_p5), %v2450_v19 }
 0x2c2   : > { %v2100_v46 = vpop.f32.mrb[29].mxu1  ;;  %v2955_v47 = vadd.f32 %v2324_v45, %v2098_v43  ;;  %v2326_v49 = vpop.f32.mrb[29].mxu0  ;;  %2483 = vst [vmem:[%s3743_s1 + $0x30] sm:$0xff] (!%p2918_p5), %v2451_v20  ;;  %2484 = vst [vmem:[%s3743_s1 + $0x38] sm:$0xff] (!%p2918_p5), %v2452_v21  ;;  %v2458_v45 = vadd.f32 (!%p2918_p5), %v3990_v4, %v2414_v7 }
 0x2c3   : > { %v2102_v50 = vpop.f32.mrb[30].mxu1  ;;  %v2956_v31 = vadd.f32 %v2326_v49, %v2100_v46  ;;  %v2328_v22 = vpop.f32.mrb[30].mxu0  ;;  %2400 = sbr.rel (%p2918_p5) target bundleno = 724 (0x2d4), region = 86  ;;  %v2459_v46 = vadd.f32 (!%p2918_p5), %v3988_v3, %v2415_v8  ;;  %2485 = vst [vmem:[%s3743_s1 + $0x40] sm:$0xff] (!%p2918_p5), %v2453_v30  ;;  %2486 = vst [vmem:[%s3743_s1 + $0x48] sm:$0xff] (!%p2918_p5), %v2454_v33 }
 0x2c4   : > { %v2104_v23 = vpop.f32.mrb[31].mxu1  ;;  %v2361_v24 = vadd.f32 %v2955_v47, %v725_v44  ;;  %v2957_v27 = vadd.f32 %v2328_v22, %v2102_v50  ;;  %v2330_v34 = vpop.f32.mrb[31].mxu0  ;;  %v2457_v44 = vadd.f32 (!%p2918_p5), %v3988_v3, %v2413_v6  ;;  %v2460_v47 = vadd.f32 (!%p2918_p5), %v3990_v4, %v2416_v9  ;;  %2487 = vst [vmem:[%s3743_s1 + $0x50] sm:$0xff] (!%p2918_p5), %v2455_v36 }
 0x2c5   : > { %v2362_v35 = vadd.f32 %v2956_v31, %v726_v48  ;;  %v2958_v51 = vadd.f32 %v2330_v34, %v2104_v23  ;;  %v2425_v41 = vld [vmem:[#allocation2 + $0xc0] sm:$0xff] (!%p2918_p5)  ;;  %2488 = vst [vmem:[%s3743_s1 + $0x58] sm:$0xff] (!%p2918_p5), %v2456_v38  ;;  %v2461_v31 = vadd.f32 (!%p2918_p5), %v3988_v3, %v2417_v10  ;;  %v2463_v22 = vadd.f32 (!%p2918_p5), %v3988_v3, %v2419_v16 }
 0x2c6   : > { %2393 = vst [vmem:[#allocation2 + $0xe0] sm:$0xff] %v2361_v24  ;;  %v2363_v52 = vadd.f32 %v2957_v27, %v727_v32  ;;  %v2426_v43 = vld [vmem:[#allocation2 + $0xc8] sm:$0xff] (!%p2918_p5)  ;;  %v2462_v32 = vadd.f32 (!%p2918_p5), %v3990_v4, %v2418_v15  ;;  %v2464_v23 = vadd.f32 (!%p2918_p5), %v3990_v4, %v2420_v17  ;;  %2489 = vst [vmem:[%s3743_s1 + $0x60] sm:$0xff] (!%p2918_p5), %v2457_v44 }
 0x2c7   : > { %2394 = vst [vmem:[#allocation2 + $0xe8] sm:$0xff] %v2362_v35  ;;  %v2364_v37 = vadd.f32 %v2958_v51, %v728_v28  ;;  %v2427_v48 = vld [vmem:[#allocation2 + $0xd0] sm:$0xff] (!%p2918_p5)  ;;  %2490 = vst [vmem:[%s3743_s1 + $0x68] sm:$0xff] (!%p2918_p5), %v2458_v45  ;;  %v2465_v34 = vadd.f32 (!%p2918_p5), %v3988_v3, %v2421_v25  ;;  %v2466_v35 = vadd.f32 (!%p2918_p5), %v3990_v4, %v2422_v26 }
 0x2c8   : > { %2395 = vst [vmem:[#allocation2 + $0xf0] sm:$0xff] %v2363_v52  ;;  %v2428_v49 = vld [vmem:[#allocation2 + $0xd8] sm:$0xff] (!%p2918_p5)  ;;  %2491 = vst [vmem:[%s3743_s1 + $0x70] sm:$0xff] (!%p2918_p5), %v2459_v46  ;;  %v2467_v51 = vadd.f32 (!%p2918_p5), %v3988_v3, %v2423_v29  ;;  %v2468_v52 = vadd.f32 (!%p2918_p5), %v3990_v4, %v2424_v39  ;;  %v2470_v40 = vadd.f32 (!%p2918_p5), %v3990_v4, %v2426_v43 }
 0x2c9   : > { %2396 = vst [vmem:[#allocation2 + $0xf8] sm:$0xff] %v2364_v37  ;;  %2492 = vst [vmem:[%s3743_s1 + $0x78] sm:$0xff] (!%p2918_p5), %v2460_v47  ;;  %v2469_v37 = vadd.f32 (!%p2918_p5), %v3988_v3, %v2425_v41  ;;  %v2471_v42 = vadd.f32 (!%p2918_p5), %v3988_v3, %v2427_v48  ;;  %v2472_v53 = vadd.f32 (!%p2918_p5), %v3990_v4, %v2428_v49 }
 0x2ca   : > { %2493 = vst [vmem:[%s3743_s1 + $0x80] sm:$0xff] %v2461_v31  ;;  %2494 = vst [vmem:[%s3743_s1 + $0x88] sm:$0xff] %v2462_v32 }
 0x2cb   : > { %2495 = vst [vmem:[%s3743_s1 + $0x90] sm:$0xff] %v2463_v22  ;;  %2496 = vst [vmem:[%s3743_s1 + $0x98] sm:$0xff] %v2464_v23 }
 0x2cc   : > { %2497 = vst [vmem:[%s3743_s1 + $0xa0] sm:$0xff] %v2465_v34  ;;  %2498 = vst [vmem:[%s3743_s1 + $0xa8] sm:$0xff] %v2466_v35 }
 0x2cd   : > { %v2429_v50 = vld [vmem:[#allocation2 + $0xe0] sm:$0xff]  ;;  %2499 = vst [vmem:[%s3743_s1 + $0xb0] sm:$0xff] %v2467_v51  ;;  %2500 = vst [vmem:[%s3743_s1 + $0xb8] sm:$0xff] %v2468_v52 }
 0x2ce   : > { %v2430_v24 = vld [vmem:[#allocation2 + $0xe8] sm:$0xff]  ;;  %v2473_v54 = vadd.f32 %v3988_v3, %v2429_v50  ;;  %2501 = vst [vmem:[%s3743_s1 + $0xc0] sm:$0xff] %v2469_v37  ;;  %2502 = vst [vmem:[%s3743_s1 + $0xc8] sm:$0xff] %v2470_v40 }
 0x2cf   : > { %v2431_v27 = vld [vmem:[#allocation2 + $0xf0] sm:$0xff]  ;;  %v2474_v55 = vadd.f32 %v3990_v4, %v2430_v24  ;;  %2503 = vst [vmem:[%s3743_s1 + $0xd0] sm:$0xff] %v2471_v42  ;;  %2504 = vst [vmem:[%s3743_s1 + $0xd8] sm:$0xff] %v2472_v53 }
 0x2d0   : > { %v2432_v28 = vld [vmem:[#allocation2 + $0xf8] sm:$0xff]  ;;  %v2475_v56 = vadd.f32 %v3988_v3, %v2431_v27  ;;  %2505 = vst [vmem:[%s3743_s1 + $0xe0] sm:$0xff] %v2473_v54 }
 0x2d1   : > { %v2476_v57 = vadd.f32 %v3990_v4, %v2432_v28  ;;  %2506 = vst [vmem:[%s3743_s1 + $0xe8] sm:$0xff] %v2474_v55 }
 0x2d2   : > { %2507 = vst [vmem:[%s3743_s1 + $0xf0] sm:$0xff] %v2475_v56 }
 0x2d3   : > { %2508 = vst [vmem:[%s3743_s1 + $0xf8] sm:$0xff] %v2476_v57 }
 0x2d4 PF: > { %2515 = sbr.rel (!%p3315_p12) target bundleno = 742 (0x2e6), region = 90  ;;  %s2926_s16 = sshll.u32 (%p3315_p12), %s3186_s19, 4  ;;  %v2534_v58 = vld [vmem:[%s3743_s1] sm:$0xff] (%p3315_p12)  ;;  %v2536_v59 = vld [vmem:[%s3743_s1 + $0x8] sm:$0xff] (%p3315_p12)  ;;  %v2538_v60 = vld [vmem:[%s3743_s1 + $0x10] sm:$0xff] (%p3315_p12) }
 0x2d5   : > { %s4065_s5 = scalar_lea.vmem (%p3315_p12), %s4164_s3, %s2926_s16  ;;  %v2540_v61 = vld [vmem:[%s3743_s1 + $0x18] sm:$0xff] (%p3315_p12)  ;;  %v2542_v62 = vld [vmem:[%s3743_s1 + $0x20] sm:$0xff] (%p3315_p12)  ;;  %v2544_v63 = vld [vmem:[%s3743_s1 + $0x28] sm:$0xff] (%p3315_p12) }
 0x2d6   : > { %2535 = vst [vmem:[%s4065_s5] sm:$0xff] (%p3315_p12), %v2534_v58  ;;  %2537 = vst [vmem:[%s4065_s5 + $0x8] sm:$0xff] (%p3315_p12), %v2536_v59  ;;  %v2546_v0 = vld [vmem:[%s3743_s1 + $0x30] sm:$0xff] (%p3315_p12)  ;;  %v2548_v1 = vld [vmem:[%s3743_s1 + $0x38] sm:$0xff] (%p3315_p12) }
 0x2d7   : > { %2539 = vst [vmem:[%s4065_s5 + $0x20] sm:$0xff] (%p3315_p12), %v2538_v60  ;;  %2541 = vst [vmem:[%s4065_s5 + $0x28] sm:$0xff] (%p3315_p12), %v2540_v61  ;;  %v2550_v2 = vld [vmem:[%s3743_s1 + $0x40] sm:$0xff] (%p3315_p12)  ;;  %v2552_v3 = vld [vmem:[%s3743_s1 + $0x48] sm:$0xff] (%p3315_p12) }
 0x2d8   : > { %2543 = vst [vmem:[%s4065_s5 + $0x40] sm:$0xff] (%p3315_p12), %v2542_v62  ;;  %2545 = vst [vmem:[%s4065_s5 + $0x48] sm:$0xff] (%p3315_p12), %v2544_v63  ;;  %v2554_v4 = vld [vmem:[%s3743_s1 + $0x50] sm:$0xff] (%p3315_p12)  ;;  %v2556_v5 = vld [vmem:[%s3743_s1 + $0x58] sm:$0xff] (%p3315_p12) }
 0x2d9   : > { %2547 = vst [vmem:[%s4065_s5 + $0x60] sm:$0xff] (%p3315_p12), %v2546_v0  ;;  %2549 = vst [vmem:[%s4065_s5 + $0x68] sm:$0xff] (%p3315_p12), %v2548_v1  ;;  %v2558_v6 = vld [vmem:[%s3743_s1 + $0x60] sm:$0xff] (%p3315_p12)  ;;  %v2560_v7 = vld [vmem:[%s3743_s1 + $0x68] sm:$0xff] (%p3315_p12) }
 0x2da   : > { %2551 = vst [vmem:[%s4065_s5 + $0x80] sm:$0xff] (%p3315_p12), %v2550_v2  ;;  %2553 = vst [vmem:[%s4065_s5 + $0x88] sm:$0xff] (%p3315_p12), %v2552_v3  ;;  %v2562_v8 = vld [vmem:[%s3743_s1 + $0x70] sm:$0xff] (%p3315_p12)  ;;  %v2564_v9 = vld [vmem:[%s3743_s1 + $0x78] sm:$0xff] (%p3315_p12) }
 0x2db   : > { %2555 = vst [vmem:[%s4065_s5 + $0xa0] sm:$0xff] %v2554_v4  ;;  %2557 = vst [vmem:[%s4065_s5 + $0xa8] sm:$0xff] %v2556_v5  ;;  %v2566_v10 = vld [vmem:[%s3743_s1 + $0x80] sm:$0xff]  ;;  %v2568_v11 = vld [vmem:[%s3743_s1 + $0x88] sm:$0xff] }
 0x2dc   : > { %2559 = vst [vmem:[%s4065_s5 + $0xc0] sm:$0xff] %v2558_v6  ;;  %2561 = vst [vmem:[%s4065_s5 + $0xc8] sm:$0xff] %v2560_v7  ;;  %v2570_v12 = vld [vmem:[%s3743_s1 + $0x90] sm:$0xff]  ;;  %v2572_v13 = vld [vmem:[%s3743_s1 + $0x98] sm:$0xff] }
 0x2dd   : > { %2563 = vst [vmem:[%s4065_s5 + $0xe0] sm:$0xff] %v2562_v8  ;;  %2565 = vst [vmem:[%s4065_s5 + $0xe8] sm:$0xff] %v2564_v9  ;;  %v2574_v14 = vld [vmem:[%s3743_s1 + $0xa0] sm:$0xff]  ;;  %v2576_v15 = vld [vmem:[%s3743_s1 + $0xa8] sm:$0xff] }
 0x2de   : > { %2567 = vst [vmem:[%s4065_s5 + $0x100] sm:$0xff] %v2566_v10  ;;  %2569 = vst [vmem:[%s4065_s5 + $0x108] sm:$0xff] %v2568_v11  ;;  %v2578_v16 = vld [vmem:[%s3743_s1 + $0xb0] sm:$0xff]  ;;  %v2580_v17 = vld [vmem:[%s3743_s1 + $0xb8] sm:$0xff] }
 0x2df   : > { %2571 = vst [vmem:[%s4065_s5 + $0x120] sm:$0xff] %v2570_v12  ;;  %2573 = vst [vmem:[%s4065_s5 + $0x128] sm:$0xff] %v2572_v13  ;;  %v2582_v18 = vld [vmem:[%s3743_s1 + $0xc0] sm:$0xff]  ;;  %v2584_v19 = vld [vmem:[%s3743_s1 + $0xc8] sm:$0xff] }
 0x2e0   : > { %2575 = vst [vmem:[%s4065_s5 + $0x140] sm:$0xff] %v2574_v14  ;;  %2577 = vst [vmem:[%s4065_s5 + $0x148] sm:$0xff] %v2576_v15  ;;  %v2586_v20 = vld [vmem:[%s3743_s1 + $0xd0] sm:$0xff]  ;;  %v2588_v21 = vld [vmem:[%s3743_s1 + $0xd8] sm:$0xff] }
 0x2e1   : > { %2579 = vst [vmem:[%s4065_s5 + $0x160] sm:$0xff] %v2578_v16  ;;  %2581 = vst [vmem:[%s4065_s5 + $0x168] sm:$0xff] %v2580_v17  ;;  %v2590_v25 = vld [vmem:[%s3743_s1 + $0xe0] sm:$0xff]  ;;  %v2592_v26 = vld [vmem:[%s3743_s1 + $0xe8] sm:$0xff] }
 0x2e2   : > { %2583 = vst [vmem:[%s4065_s5 + $0x180] sm:$0xff] %v2582_v18  ;;  %2585 = vst [vmem:[%s4065_s5 + $0x188] sm:$0xff] %v2584_v19  ;;  %v2594_v29 = vld [vmem:[%s3743_s1 + $0xf0] sm:$0xff]  ;;  %v2596_v30 = vld [vmem:[%s3743_s1 + $0xf8] sm:$0xff] }
 0x2e3   : > { %2587 = vst [vmem:[%s4065_s5 + $0x1a0] sm:$0xff] %v2586_v20  ;;  %2589 = vst [vmem:[%s4065_s5 + $0x1a8] sm:$0xff] %v2588_v21 }
 0x2e4   : > { %2591 = vst [vmem:[%s4065_s5 + $0x1c0] sm:$0xff] %v2590_v25  ;;  %2593 = vst [vmem:[%s4065_s5 + $0x1c8] sm:$0xff] %v2592_v26 }
 0x2e5   : > { %2595 = vst [vmem:[%s4065_s5 + $0x1e0] sm:$0xff] %v2594_v29  ;;  %2597 = vst [vmem:[%s4065_s5 + $0x1e8] sm:$0xff] %v2596_v30 }
 0x2e6 PF: > { %s13_s22 = sadd.s32 1, %s3198_s22   ;;  %s4174_s10 = sld [smem:[#allocation6_spill]] }
 0x2e7   : > { %p10_p6 = scmp.ge.s32.totalorder %s13_s22, 6   ;;  %s4175_s12 = smov %s3162_s13 }
 0x2e8   : > { %s4176_s13 = smov %s3313_s9  ;;  %s4177_s14 = smov %s3170_s15 }
 0x2e9   : > { %s4178_s15 = smov %s3310_s8  ;;  %s4179_s16 = smov %s3178_s17 }
 0x2ea   : > { %s4180_s17 = smov %s3296_s30  ;;  %s4181_s18 = smov %s3190_s20 }
 0x2eb   : > { %s4182_s19 = smov %s3194_s21  ;;  %s4183_s20 = smov %s4186_s24 }
 0x2ec   : > { %s4184_s21 = smov %s4174_s10  ;;  %12 = sbr.rel (!%p10_p6) target bundleno = 9 (0x9), region = 155 }

</bundles_post_ra>
